<compile_context>
chip_gen: v6e
topology: v6e:2x2x1
jax: 0.10.0
libtpu: 0.0.40
codegen_flags: <defaults>
</compile_context>

<pallas_src>
import functools

import jax
import jax.numpy as jnp
from jax.experimental import pallas as pl
from jax.experimental.pallas import tpu as pltpu


# ----------------------------------------------------------------------------
# The single fused Pallas kernel (channels-first: (C, L) tiles per batch row)
# ----------------------------------------------------------------------------

def _qblock_fused_kernel(x_ref,
                         w1e_ref, sh1_ref, she_ref,
                         w2_ref, sh2_ref,
                         w3_ref, sh3_ref,
                         dw_ref,
                         cw1_ref, cb1_ref, cw2_ref, cb2_ref,
                         o_ref,
                         *, bt, cout, length):
    # Weights / per-channel shifts: loaded into vregs ONCE per grid step and reused for all
    # `bt` batch elements packed into this step.
    w1e = w1e_ref[...]                     # (Cout + C4, Cin) bf16  conv1 ++ shortcut, BN folded
    sh1 = sh1_ref[...]                     # (Cout, 1) f32
    she = she_ref[...]                     # (C4, 1)  f32
    w2 = w2_ref[...]                       # (Cout, 3*Cout) bf16    k=3 taps merged, BN folded
    sh2 = sh2_ref[...]                     # (Cout, 1) f32
    w3 = w3_ref[...]                       # (C4, Cout) bf16        BN folded
    sh3 = sh3_ref[...]                     # (C4, 1) f32
    dw = dw_ref[...]                       # (C4, 3)  f32 depthwise taps
    cw1 = cw1_ref[...]                     # (Cr, C4) bf16
    cb1 = cb1_ref[...]                     # (Cr, 1)  f32
    cw2 = cw2_ref[...]                     # (C4, Cr) bf16
    cb2 = cb2_ref[...]                     # (C4, 1)  f32

    L = length

    def mm(w, a):
        # bf16 MXU matmul, f32 accumulation.
        return jnp.dot(w, a.astype(jnp.bfloat16), preferred_element_type=jnp.float32)

    def halos(h):
        # h[:, l-1] and h[:, l+1] with zero boundary columns ("same" padding for k=3):
        # XLU lane rotations (non-negative shifts only) + VPU boundary masks.
        cols = jax.lax.broadcasted_iota(jnp.int32, h.shape, 1)
        prev = jnp.where(cols == 0, 0.0, pltpu.roll(h, shift=1, axis=1))
        nxt = jnp.where(cols == L - 1, 0.0, pltpu.roll(h, shift=L - 1, axis=1))
        return prev, nxt

    for b in range(bt):                    # static unroll; weights stay resident in vregs
        x = x_ref[b]                                            # (Cin, L) f32

        # conv1 (1x1 Q-conv + folded BN) fused with the shortcut projection: ONE MXU pass.
        y = mm(w1e, x)                                          # (Cout + C4, L)
        h = jnp.maximum(y[:cout, :] + sh1, 0.0)                 # (Cout, L)  relu(bn1(conv1(x)))
        res = y[cout:, :] + she                                 # (C4, L)    extra(x)

        # conv2 (k=3, pad=1 Q-conv + folded BN + ReLU): ONE matmul, contraction depth 3*Cout.
        hp, hn = halos(h)
        h2 = mm(w2, jnp.concatenate([hp, h, hn], axis=0))       # (Cout, L)
        h2 = jnp.maximum(h2 + sh2, 0.0)

        # conv3 (1x1 Q-conv, ch_out -> 4*ch_out, + folded BN + ReLU).
        h3 = jnp.maximum(mm(w3, h2) + sh3, 0.0)                 # (C4, L)

        # DWBlock (approx): depthwise conv k=3 pad=1 + ReLU (pure VPU).
        dp, dn = halos(h3)
        d = jnp.maximum(dp * dw[:, 0:1] + h3 * dw[:, 1:2] + dn * dw[:, 2:3], 0.0)

        # CAM channel attention: global avg/max pooling over L (lane reductions) on the
        # in-VMEM tensor; both pooled vectors go through the shared 2-layer quaternion MLP
        # in one batched matmul pass.  Biases are applied per branch, as in the reference.
        pooled = jnp.concatenate(
            [jnp.mean(d, axis=1, keepdims=True), jnp.max(d, axis=1, keepdims=True)], axis=1)
        g = jnp.maximum(mm(cw1, pooled) + cb1, 0.0)             # (Cr, 2)
        g = mm(cw2, g) + cb2                                    # (C4, 2)
        s = g[:, 0:1] + g[:, 1:2]                               # (C4, 1)
        gate = 1.0 / (1.0 + jnp.exp(-s))                        # exact sigmoid (tiny tensor)

        # gate * dwblock output + shortcut, final ReLU, stored directly in (C4, L) NCL layout.
        o_ref[b] = jnp.maximum(d * gate + res, 0.0)


# ----------------------------------------------------------------------------
# Parameter construction (deterministic, synthetic)
# ----------------------------------------------------------------------------

def quaternion_conv_weight(key, in_ch, out_ch, ksize):
    """Hamilton-product structured weight, shape (out_ch, in_ch, ksize)."""
    assert in_ch % 4 == 0 and out_ch % 4 == 0
    ks = jax.random.split(key, 4)
    shape = (out_ch // 4, in_ch // 4, ksize)
    scale = 1.0 / jnp.sqrt(jnp.float32(in_ch * ksize))
    r, i, j, k = [jax.random.normal(kk, shape, jnp.float32) * scale for kk in ks]
    row_r = jnp.concatenate([r, -i, -j, -k], axis=1)
    row_i = jnp.concatenate([i,  r, -k,  j], axis=1)
    row_j = jnp.concatenate([j,  k,  r, -i], axis=1)
    row_k = jnp.concatenate([k, -j,  i,  r], axis=1)
    return jnp.concatenate([row_r, row_i, row_j, row_k], axis=0)


def bn_params(key, ch):
    k1, k2, k3, k4 = jax.random.split(key, 4)
    gamma = 1.0 + 0.1 * jax.random.normal(k1, (ch,), jnp.float32)
    beta = 0.1 * jax.random.normal(k2, (ch,), jnp.float32)
    mean = 0.1 * jax.random.normal(k3, (ch,), jnp.float32)
    var = 1.0 + 0.1 * jnp.abs(jax.random.normal(k4, (ch,), jnp.float32))
    return gamma, beta, mean, var


def fold_bn(bias, bn, eps=1e-5):
    gamma, beta, mean, var = bn
    scale = gamma / jnp.sqrt(var + eps)
    shift = beta + (bias - mean) * scale
    return scale, shift


def init_qblock_params(key, ch_in, ch_out):
    C4 = ch_out * 4
    Cr = C4 // 16
    keys = jax.random.split(key, 16)
    p = {}
    # conv1: Q(ch_in -> ch_out, k=1) + bn1
    p["w1"] = quaternion_conv_weight(keys[0], ch_in, ch_out, 1)
    p["b1"] = 0.01 * jax.random.normal(keys[1], (ch_out,), jnp.float32)
    p["bn1"] = bn_params(keys[2], ch_out)
    # conv2: Q(ch_out -> ch_out, k=3, pad=1) + bn2
    p["w2"] = quaternion_conv_weight(keys[3], ch_out, ch_out, 3)
    p["b2"] = 0.01 * jax.random.normal(keys[4], (ch_out,), jnp.float32)
    p["bn2"] = bn_params(keys[5], ch_out)
    # conv3: Q(ch_out -> 4*ch_out, k=1) + bn3
    p["w3"] = quaternion_conv_weight(keys[6], ch_out, C4, 1)
    p["b3"] = 0.01 * jax.random.normal(keys[7], (C4,), jnp.float32)
    p["bn3"] = bn_params(keys[8], C4)
    # dwblock (approx): depthwise k=3 weights, channels-first taps (C4, 3)
    p["dw"] = 0.3 * jax.random.normal(keys[9], (C4, 3), jnp.float32)
    # CAM: Q(C4 -> Cr), Q(Cr -> C4)
    p["cam_w1"] = quaternion_conv_weight(keys[10], C4, Cr, 1)
    p["cam_b1"] = 0.01 * jax.random.normal(keys[11], (Cr,), jnp.float32)
    p["cam_w2"] = quaternion_conv_weight(keys[12], Cr, C4, 1)
    p["cam_b2"] = 0.01 * jax.random.normal(keys[13], (C4,), jnp.float32)
    # extra (shortcut projection, since ch_in != 4*ch_out): Q(ch_in -> C4, k=1) + BN
    p["we"] = quaternion_conv_weight(keys[14], ch_in, C4, 1)
    p["be"] = jnp.zeros((C4,), jnp.float32)
    p["bne"] = bn_params(keys[15], C4)
    return p


# ----------------------------------------------------------------------------
# Qblock forward (single fused pallas_call, no wrapper transposes)
# ----------------------------------------------------------------------------

def qblock_forward(x_ncl, p, *, batch_tile=4):
    """x_ncl: (B, ch_in, L) float32 (PyTorch conv1d layout) -> (B, 4*ch_out, L) float32."""
    B, Cin, L = x_ncl.shape
    Cout = p["w1"].shape[0]
    C4 = p["w3"].shape[0]
    Cr = p["cam_w1"].shape[0]

    # Largest divisor of B not exceeding batch_tile: batch rows packed per grid step.
    bt = max(d for d in range(1, min(B, batch_tile) + 1) if B % d == 0)

    bf = jnp.bfloat16
    f32 = jnp.float32

    # Fold eval-mode BatchNorm into the conv weight rows (f32) and per-channel shifts.
    s1, sh1 = fold_bn(p["b1"], p["bn1"])
    s2, sh2 = fold_bn(p["b2"], p["bn2"])
    s3, sh3 = fold_bn(p["b3"], p["bn3"])
    se, she = fold_bn(p["be"], p["bne"])

    w1f = p["w1"][:, :, 0] * s1[:, None]                         # (Cout, Cin)
    wef = p["we"][:, :, 0] * se[:, None]                         # (C4, Cin)
    w1e = jnp.concatenate([w1f, wef], axis=0).astype(bf)         # conv1 ++ shortcut: one MXU pass

    w2m = jnp.concatenate(
        [p["w2"][:, :, 0], p["w2"][:, :, 1], p["w2"][:, :, 2]], axis=1)
    w2m = (w2m * s2[:, None]).astype(bf)                         # (Cout, 3*Cout) merged k=3 taps

    w3f = (p["w3"][:, :, 0] * s3[:, None]).astype(bf)            # (C4, Cout)
    cw1 = p["cam_w1"][:, :, 0].astype(bf)                        # (Cr, C4)
    cw2 = p["cam_w2"][:, :, 0].astype(bf)                        # (C4, Cr)

    col = lambda v: v.reshape(-1, 1).astype(f32)
    full = lambda shape: pl.BlockSpec(shape, lambda g: (0, 0))   # grid-invariant weight blocks

    kernel = functools.partial(_qblock_fused_kernel, bt=bt, cout=Cout, length=L)

    out = pl.pallas_call(
        kernel,
        out_shape=jax.ShapeDtypeStruct((B, C4, L), f32),
        grid=(B // bt,),
        in_specs=[
            pl.BlockSpec((bt, Cin, L), lambda g: (g, 0, 0)),                   # x, NCL as-is
            full((Cout + C4, Cin)), full((Cout, 1)), full((C4, 1)),            # conv1 ++ shortcut
            full((Cout, 3 * Cout)), full((Cout, 1)),                           # conv2 (merged taps)
            full((C4, Cout)), full((C4, 1)),                                   # conv3
            full((C4, 3)),                                                     # depthwise
            full((Cr, C4)), full((Cr, 1)), full((C4, Cr)), full((C4, 1)),      # CAM
        ],
        out_specs=pl.BlockSpec((bt, C4, L), lambda g: (g, 0, 0)),
        compiler_params=pltpu.CompilerParams(
            dimension_semantics=("parallel",),           # batch blocks shard across TensorCores
            vmem_limit_bytes=64 * 1024 * 1024,           # > 16/32 MiB defaults, <= v7x physical
        ),
    )(x_ncl.astype(f32),
      w1e, col(sh1), col(she),
      w2m, col(sh2),
      w3f, col(sh3),
      p["dw"].astype(f32),
      cw1, col(p["cam_b1"]), cw2, col(p["cam_b2"]))

    return out


if __name__ == "__main__":
    B, ch_in, ch_out, L = 2, 16, 16, 16
    key = jax.random.PRNGKey(0)
    kx, kp = jax.random.split(key)
    x = jax.random.normal(kx, (B, ch_in, L), jnp.float32)        # NCL, PyTorch conv1d layout
    params = init_qblock_params(kp, ch_in, ch_out)

    fwd = jax.jit(functools.partial(qblock_forward, p=params))
    y = jax.block_until_ready(fwd(x))

    assert y.shape == (B, ch_out * 4, L), y.shape
    assert bool(jnp.all(jnp.isfinite(y)))
    assert bool(jnp.all(y >= 0.0))  # final ReLU
    print("KERNEL_OK")
</pallas_src>

<mosaic_0001>
module attributes {stable_mosaic.version = 11 : i64} {
  func.func @_qblock_fused_kernel(%arg0: i32, %arg1: memref<2x16x16xf32, #tpu.memory_space<vmem>>, %arg2: memref<80x16xbf16, #tpu.memory_space<vmem>>, %arg3: memref<16x1xf32, #tpu.memory_space<vmem>>, %arg4: memref<64x1xf32, #tpu.memory_space<vmem>>, %arg5: memref<16x48xbf16, #tpu.memory_space<vmem>>, %arg6: memref<16x1xf32, #tpu.memory_space<vmem>>, %arg7: memref<64x16xbf16, #tpu.memory_space<vmem>>, %arg8: memref<64x1xf32, #tpu.memory_space<vmem>>, %arg9: memref<64x3xf32, #tpu.memory_space<vmem>>, %arg10: memref<4x64xbf16, #tpu.memory_space<vmem>>, %arg11: memref<4x1xf32, #tpu.memory_space<vmem>>, %arg12: memref<64x4xbf16, #tpu.memory_space<vmem>>, %arg13: memref<64x1xf32, #tpu.memory_space<vmem>>, %arg14: memref<2x64x16xf32, #tpu.memory_space<vmem>>) attributes {dimension_semantics = [#tpu.dimension_semantics<parallel>], iteration_bounds = array<i64: 1>, scalar_prefetch = 0 : i64, scratch_operands = 0 : i64, tpu.core_type = #tpu.core_type<tc>, window_params = [{transform_indices = @transform_0, window_bounds = array<i64: 2, 16, 16>}, {pipeline_mode = #tpu.pipeline_mode<synchronous>, transform_indices = @transform_1, window_bounds = array<i64: 80, 16>}, {pipeline_mode = #tpu.pipeline_mode<synchronous>, transform_indices = @transform_2, window_bounds = array<i64: 16, 1>}, {pipeline_mode = #tpu.pipeline_mode<synchronous>, transform_indices = @transform_3, window_bounds = array<i64: 64, 1>}, {pipeline_mode = #tpu.pipeline_mode<synchronous>, transform_indices = @transform_4, window_bounds = array<i64: 16, 48>}, {pipeline_mode = #tpu.pipeline_mode<synchronous>, transform_indices = @transform_5, window_bounds = array<i64: 16, 1>}, {pipeline_mode = #tpu.pipeline_mode<synchronous>, transform_indices = @transform_6, window_bounds = array<i64: 64, 16>}, {pipeline_mode = #tpu.pipeline_mode<synchronous>, transform_indices = @transform_7, window_bounds = array<i64: 64, 1>}, {pipeline_mode = #tpu.pipeline_mode<synchronous>, transform_indices = @transform_8, window_bounds = array<i64: 64, 3>}, {pipeline_mode = #tpu.pipeline_mode<synchronous>, transform_indices = @transform_9, window_bounds = array<i64: 4, 64>}, {pipeline_mode = #tpu.pipeline_mode<synchronous>, transform_indices = @transform_10, window_bounds = array<i64: 4, 1>}, {pipeline_mode = #tpu.pipeline_mode<synchronous>, transform_indices = @transform_11, window_bounds = array<i64: 64, 4>}, {pipeline_mode = #tpu.pipeline_mode<synchronous>, transform_indices = @transform_12, window_bounds = array<i64: 64, 1>}, {transform_indices = @transform_13, window_bounds = array<i64: 2, 64, 16>}]} {
    %c0 = arith.constant 0 : index
    %c0_0 = arith.constant 0 : index
    %0 = vector.load %arg2[%c0, %c0_0] : memref<80x16xbf16, #tpu.memory_space<vmem>>, vector<80x16xbf16>
    %c0_1 = arith.constant 0 : index
    %c0_2 = arith.constant 0 : index
    %1 = vector.load %arg3[%c0_1, %c0_2] : memref<16x1xf32, #tpu.memory_space<vmem>>, vector<16x1xf32>
    %c0_3 = arith.constant 0 : index
    %c0_4 = arith.constant 0 : index
    %2 = vector.load %arg4[%c0_3, %c0_4] : memref<64x1xf32, #tpu.memory_space<vmem>>, vector<64x1xf32>
    %c0_5 = arith.constant 0 : index
    %c0_6 = arith.constant 0 : index
    %3 = vector.load %arg5[%c0_5, %c0_6] : memref<16x48xbf16, #tpu.memory_space<vmem>>, vector<16x48xbf16>
    %c0_7 = arith.constant 0 : index
    %c0_8 = arith.constant 0 : index
    %4 = vector.load %arg6[%c0_7, %c0_8] : memref<16x1xf32, #tpu.memory_space<vmem>>, vector<16x1xf32>
    %c0_9 = arith.constant 0 : index
    %c0_10 = arith.constant 0 : index
    %5 = vector.load %arg7[%c0_9, %c0_10] : memref<64x16xbf16, #tpu.memory_space<vmem>>, vector<64x16xbf16>
    %c0_11 = arith.constant 0 : index
    %c0_12 = arith.constant 0 : index
    %6 = vector.load %arg8[%c0_11, %c0_12] : memref<64x1xf32, #tpu.memory_space<vmem>>, vector<64x1xf32>
    %c0_13 = arith.constant 0 : index
    %c0_14 = arith.constant 0 : index
    %7 = vector.load %arg9[%c0_13, %c0_14] : memref<64x3xf32, #tpu.memory_space<vmem>>, vector<64x3xf32>
    %c0_15 = arith.constant 0 : index
    %c0_16 = arith.constant 0 : index
    %8 = vector.load %arg10[%c0_15, %c0_16] : memref<4x64xbf16, #tpu.memory_space<vmem>>, vector<4x64xbf16>
    %c0_17 = arith.constant 0 : index
    %c0_18 = arith.constant 0 : index
    %9 = vector.load %arg11[%c0_17, %c0_18] : memref<4x1xf32, #tpu.memory_space<vmem>>, vector<4x1xf32>
    %c0_19 = arith.constant 0 : index
    %c0_20 = arith.constant 0 : index
    %10 = vector.load %arg12[%c0_19, %c0_20] : memref<64x4xbf16, #tpu.memory_space<vmem>>, vector<64x4xbf16>
    %c0_21 = arith.constant 0 : index
    %c0_22 = arith.constant 0 : index
    %11 = vector.load %arg13[%c0_21, %c0_22] : memref<64x1xf32, #tpu.memory_space<vmem>>, vector<64x1xf32>
    %c0_23 = arith.constant 0 : index
    %c0_24 = arith.constant 0 : index
    %c0_25 = arith.constant 0 : index
    %12 = vector.load %arg1[%c0_23, %c0_24, %c0_25] : memref<2x16x16xf32, #tpu.memory_space<vmem>>, vector<1x16x16xf32>
    %13 = vector.shape_cast %12 : vector<1x16x16xf32> to vector<16x16xf32>
    %14 = arith.truncf %13 : vector<16x16xf32> to vector<16x16xbf16>
    %cst = arith.constant dense<0.000000e+00> : vector<80x16xf32>
    %15 = tpu.matmul %0, %14, %cst {dimension_numbers = #tpu.dot_dimension_numbers<[1], [0], [0], [1], [0, 0, 1, 1], [], []>} : vector<80x16xbf16>, vector<16x16xbf16>, vector<80x16xf32> -> vector<80x16xf32>
    %16 = vector.extract_strided_slice %15 {offsets = [0, 0], sizes = [16, 16], strides = [1, 1]} : vector<80x16xf32> to vector<16x16xf32>
    %17 = vector.broadcast %1 : vector<16x1xf32> to vector<16x16xf32>
    %18 = arith.addf %16, %17 : vector<16x16xf32>
    %cst_26 = arith.constant 0.000000e+00 : f32
    %19 = vector.broadcast %cst_26 : f32 to vector<16x16xf32>
    %20 = arith.maximumf %18, %19 : vector<16x16xf32>
    %21 = vector.extract_strided_slice %15 {offsets = [16, 0], sizes = [64, 16], strides = [1, 1]} : vector<80x16xf32> to vector<64x16xf32>
    %22 = vector.broadcast %2 : vector<64x1xf32> to vector<64x16xf32>
    %23 = arith.addf %21, %22 : vector<64x16xf32>
    %24 = tpu.iota {dimensions = array<i32: 1>} : vector<16x16xi32>
    %c0_i32 = arith.constant 0 : i32
    %25 = vector.broadcast %c0_i32 : i32 to vector<16x16xi32>
    %26 = arith.cmpi eq, %24, %25 : vector<16x16xi32>
    %c1_i32 = arith.constant 1 : i32
    %27 = tpu.dynamic_rotate %20 by %c1_i32 dim 1 : vector<16x16xf32>, i32 -> vector<16x16xf32>
    %cst_27 = arith.constant 0.000000e+00 : f32
    %28 = vector.broadcast %cst_27 : f32 to vector<16x16xf32>
    %29 = arith.select %26, %28, %27 : vector<16x16xi1>, vector<16x16xf32>
    %c15_i32 = arith.constant 15 : i32
    %30 = vector.broadcast %c15_i32 : i32 to vector<16x16xi32>
    %31 = arith.cmpi eq, %24, %30 : vector<16x16xi32>
    %c15_i32_28 = arith.constant 15 : i32
    %32 = tpu.dynamic_rotate %20 by %c15_i32_28 dim 1 : vector<16x16xf32>, i32 -> vector<16x16xf32>
    %cst_29 = arith.constant 0.000000e+00 : f32
    %33 = vector.broadcast %cst_29 : f32 to vector<16x16xf32>
    %34 = arith.select %31, %33, %32 : vector<16x16xi1>, vector<16x16xf32>
    %35 = tpu.concatenate %29, %20, %34 in 0 : vector<16x16xf32>, vector<16x16xf32>, vector<16x16xf32> -> vector<48x16xf32>
    %36 = arith.truncf %35 : vector<48x16xf32> to vector<48x16xbf16>
    %cst_30 = arith.constant dense<0.000000e+00> : vector<16x16xf32>
    %37 = tpu.matmul %3, %36, %cst_30 {dimension_numbers = #tpu.dot_dimension_numbers<[1], [0], [0], [1], [0, 0, 1, 1], [], []>} : vector<16x48xbf16>, vector<48x16xbf16>, vector<16x16xf32> -> vector<16x16xf32>
    %38 = vector.broadcast %4 : vector<16x1xf32> to vector<16x16xf32>
    %39 = arith.addf %37, %38 : vector<16x16xf32>
    %cst_31 = arith.constant 0.000000e+00 : f32
    %40 = vector.broadcast %cst_31 : f32 to vector<16x16xf32>
    %41 = arith.maximumf %39, %40 : vector<16x16xf32>
    %42 = arith.truncf %41 : vector<16x16xf32> to vector<16x16xbf16>
    %cst_32 = arith.constant dense<0.000000e+00> : vector<64x16xf32>
    %43 = tpu.matmul %5, %42, %cst_32 {dimension_numbers = #tpu.dot_dimension_numbers<[1], [0], [0], [1], [0, 0, 1, 1], [], []>} : vector<64x16xbf16>, vector<16x16xbf16>, vector<64x16xf32> -> vector<64x16xf32>
    %44 = vector.broadcast %6 : vector<64x1xf32> to vector<64x16xf32>
    %45 = arith.addf %43, %44 : vector<64x16xf32>
    %cst_33 = arith.constant 0.000000e+00 : f32
    %46 = vector.broadcast %cst_33 : f32 to vector<64x16xf32>
    %47 = arith.maximumf %45, %46 : vector<64x16xf32>
    %48 = tpu.iota {dimensions = array<i32: 1>} : vector<64x16xi32>
    %c0_i32_34 = arith.constant 0 : i32
    %49 = vector.broadcast %c0_i32_34 : i32 to vector<64x16xi32>
    %50 = arith.cmpi eq, %48, %49 : vector<64x16xi32>
    %c1_i32_35 = arith.constant 1 : i32
    %51 = tpu.dynamic_rotate %47 by %c1_i32_35 dim 1 : vector<64x16xf32>, i32 -> vector<64x16xf32>
    %cst_36 = arith.constant 0.000000e+00 : f32
    %52 = vector.broadcast %cst_36 : f32 to vector<64x16xf32>
    %53 = arith.select %50, %52, %51 : vector<64x16xi1>, vector<64x16xf32>
    %c15_i32_37 = arith.constant 15 : i32
    %54 = vector.broadcast %c15_i32_37 : i32 to vector<64x16xi32>
    %55 = arith.cmpi eq, %48, %54 : vector<64x16xi32>
    %c15_i32_38 = arith.constant 15 : i32
    %56 = tpu.dynamic_rotate %47 by %c15_i32_38 dim 1 : vector<64x16xf32>, i32 -> vector<64x16xf32>
    %cst_39 = arith.constant 0.000000e+00 : f32
    %57 = vector.broadcast %cst_39 : f32 to vector<64x16xf32>
    %58 = arith.select %55, %57, %56 : vector<64x16xi1>, vector<64x16xf32>
    %59 = vector.extract_strided_slice %7 {offsets = [0, 0], sizes = [64, 1], strides = [1, 1]} : vector<64x3xf32> to vector<64x1xf32>
    %60 = vector.broadcast %59 : vector<64x1xf32> to vector<64x16xf32>
    %61 = arith.mulf %53, %60 : vector<64x16xf32>
    %62 = vector.extract_strided_slice %7 {offsets = [0, 1], sizes = [64, 1], strides = [1, 1]} : vector<64x3xf32> to vector<64x1xf32>
    %63 = vector.broadcast %62 : vector<64x1xf32> to vector<64x16xf32>
    %64 = arith.mulf %47, %63 : vector<64x16xf32>
    %65 = arith.addf %61, %64 : vector<64x16xf32>
    %66 = vector.extract_strided_slice %7 {offsets = [0, 2], sizes = [64, 1], strides = [1, 1]} : vector<64x3xf32> to vector<64x1xf32>
    %67 = vector.broadcast %66 : vector<64x1xf32> to vector<64x16xf32>
    %68 = arith.mulf %58, %67 : vector<64x16xf32>
    %69 = arith.addf %65, %68 : vector<64x16xf32>
    %cst_40 = arith.constant 0.000000e+00 : f32
    %70 = vector.broadcast %cst_40 : f32 to vector<64x16xf32>
    %71 = arith.maximumf %69, %70 : vector<64x16xf32>
    %cst_41 = arith.constant dense<0.000000e+00> : vector<64xf32>
    %72 = vector.multi_reduction <add>, %71, %cst_41 [1] : vector<64x16xf32> to vector<64xf32>
    %73 = vector.shape_cast %72 : vector<64xf32> to vector<64x1xf32>
    %cst_42 = arith.constant 1.600000e+01 : f32
    %74 = vector.broadcast %cst_42 : f32 to vector<64x1xf32>
    %75 = arith.divf %73, %74 : vector<64x1xf32>
    %cst_43 = arith.constant dense<0xFF800000> : vector<64xf32>
    %76 = vector.multi_reduction <maximumf>, %71, %cst_43 [1] : vector<64x16xf32> to vector<64xf32>
    %77 = vector.shape_cast %76 : vector<64xf32> to vector<64x1xf32>
    %78 = tpu.concatenate %75, %77 in 1 : vector<64x1xf32>, vector<64x1xf32> -> vector<64x2xf32>
    %79 = arith.truncf %78 : vector<64x2xf32> to vector<64x2xbf16>
    %cst_44 = arith.constant dense<0.000000e+00> : vector<4x2xf32>
    %80 = tpu.matmul %8, %79, %cst_44 {dimension_numbers = #tpu.dot_dimension_numbers<[1], [0], [0], [1], [0, 0, 1, 1], [], []>} : vector<4x64xbf16>, vector<64x2xbf16>, vector<4x2xf32> -> vector<4x2xf32>
    %81 = vector.broadcast %9 : vector<4x1xf32> to vector<4x2xf32>
    %82 = arith.addf %80, %81 : vector<4x2xf32>
    %cst_45 = arith.constant 0.000000e+00 : f32
    %83 = vector.broadcast %cst_45 : f32 to vector<4x2xf32>
    %84 = arith.maximumf %82, %83 : vector<4x2xf32>
    %85 = arith.truncf %84 : vector<4x2xf32> to vector<4x2xbf16>
    %cst_46 = arith.constant dense<0.000000e+00> : vector<64x2xf32>
    %86 = tpu.matmul %10, %85, %cst_46 {dimension_numbers = #tpu.dot_dimension_numbers<[1], [0], [0], [1], [0, 0, 1, 1], [], []>} : vector<64x4xbf16>, vector<4x2xbf16>, vector<64x2xf32> -> vector<64x2xf32>
    %87 = vector.broadcast %11 : vector<64x1xf32> to vector<64x2xf32>
    %88 = arith.addf %86, %87 : vector<64x2xf32>
    %89 = vector.extract_strided_slice %88 {offsets = [0, 0], sizes = [64, 1], strides = [1, 1]} : vector<64x2xf32> to vector<64x1xf32>
    %90 = vector.extract_strided_slice %88 {offsets = [0, 1], sizes = [64, 1], strides = [1, 1]} : vector<64x2xf32> to vector<64x1xf32>
    %91 = arith.addf %89, %90 : vector<64x1xf32>
    %cst_47 = arith.constant 0.000000e+00 : f32
    %92 = vector.broadcast %cst_47 : f32 to vector<64x1xf32>
    %93 = arith.subf %92, %91 : vector<64x1xf32>
    %94 = math.exp %93 : vector<64x1xf32>
    %cst_48 = arith.constant 1.000000e+00 : f32
    %95 = vector.broadcast %cst_48 : f32 to vector<64x1xf32>
    %96 = arith.addf %95, %94 : vector<64x1xf32>
    %cst_49 = arith.constant 1.000000e+00 : f32
    %97 = vector.broadcast %cst_49 : f32 to vector<64x1xf32>
    %98 = arith.divf %97, %96 : vector<64x1xf32>
    %99 = vector.broadcast %98 : vector<64x1xf32> to vector<64x16xf32>
    %100 = arith.mulf %71, %99 : vector<64x16xf32>
    %101 = arith.addf %100, %23 : vector<64x16xf32>
    %cst_50 = arith.constant 0.000000e+00 : f32
    %102 = vector.broadcast %cst_50 : f32 to vector<64x16xf32>
    %103 = arith.maximumf %101, %102 : vector<64x16xf32>
    %c0_51 = arith.constant 0 : index
    %c0_52 = arith.constant 0 : index
    %c0_53 = arith.constant 0 : index
    %104 = vector.load %arg14[%c0_51, %c0_52, %c0_53] : memref<2x64x16xf32, #tpu.memory_space<vmem>>, vector<1x64x16xf32>
    %105 = vector.shape_cast %104 : vector<1x64x16xf32> to vector<64x16xf32>
    %106 = vector.shape_cast %103 : vector<64x16xf32> to vector<1x64x16xf32>
    tpu.vector_store %arg14[%c0_51, %c0_52, %c0_53], %106 {strides = array<i32>} : memref<2x64x16xf32, #tpu.memory_space<vmem>>, vector<1x64x16xf32>,
    %c1 = arith.constant 1 : index
    %c0_54 = arith.constant 0 : index
    %c0_55 = arith.constant 0 : index
    %107 = vector.load %arg1[%c1, %c0_54, %c0_55] : memref<2x16x16xf32, #tpu.memory_space<vmem>>, vector<1x16x16xf32>
    %108 = vector.shape_cast %107 : vector<1x16x16xf32> to vector<16x16xf32>
    %109 = arith.truncf %108 : vector<16x16xf32> to vector<16x16xbf16>
    %cst_56 = arith.constant dense<0.000000e+00> : vector<80x16xf32>
    %110 = tpu.matmul %0, %109, %cst_56 {dimension_numbers = #tpu.dot_dimension_numbers<[1], [0], [0], [1], [0, 0, 1, 1], [], []>} : vector<80x16xbf16>, vector<16x16xbf16>, vector<80x16xf32> -> vector<80x16xf32>
    %111 = vector.extract_strided_slice %110 {offsets = [0, 0], sizes = [16, 16], strides = [1, 1]} : vector<80x16xf32> to vector<16x16xf32>
    %112 = vector.broadcast %1 : vector<16x1xf32> to vector<16x16xf32>
    %113 = arith.addf %111, %112 : vector<16x16xf32>
    %cst_57 = arith.constant 0.000000e+00 : f32
    %114 = vector.broadcast %cst_57 : f32 to vector<16x16xf32>
    %115 = arith.maximumf %113, %114 : vector<16x16xf32>
    %116 = vector.extract_strided_slice %110 {offsets = [16, 0], sizes = [64, 16], strides = [1, 1]} : vector<80x16xf32> to vector<64x16xf32>
    %117 = vector.broadcast %2 : vector<64x1xf32> to vector<64x16xf32>
    %118 = arith.addf %116, %117 : vector<64x16xf32>
    %119 = tpu.iota {dimensions = array<i32: 1>} : vector<16x16xi32>
    %c0_i32_58 = arith.constant 0 : i32
    %120 = vector.broadcast %c0_i32_58 : i32 to vector<16x16xi32>
    %121 = arith.cmpi eq, %119, %120 : vector<16x16xi32>
    %c1_i32_59 = arith.constant 1 : i32
    %122 = tpu.dynamic_rotate %115 by %c1_i32_59 dim 1 : vector<16x16xf32>, i32 -> vector<16x16xf32>
    %cst_60 = arith.constant 0.000000e+00 : f32
    %123 = vector.broadcast %cst_60 : f32 to vector<16x16xf32>
    %124 = arith.select %121, %123, %122 : vector<16x16xi1>, vector<16x16xf32>
    %c15_i32_61 = arith.constant 15 : i32
    %125 = vector.broadcast %c15_i32_61 : i32 to vector<16x16xi32>
    %126 = arith.cmpi eq, %119, %125 : vector<16x16xi32>
    %c15_i32_62 = arith.constant 15 : i32
    %127 = tpu.dynamic_rotate %115 by %c15_i32_62 dim 1 : vector<16x16xf32>, i32 -> vector<16x16xf32>
    %cst_63 = arith.constant 0.000000e+00 : f32
    %128 = vector.broadcast %cst_63 : f32 to vector<16x16xf32>
    %129 = arith.select %126, %128, %127 : vector<16x16xi1>, vector<16x16xf32>
    %130 = tpu.concatenate %124, %115, %129 in 0 : vector<16x16xf32>, vector<16x16xf32>, vector<16x16xf32> -> vector<48x16xf32>
    %131 = arith.truncf %130 : vector<48x16xf32> to vector<48x16xbf16>
    %cst_64 = arith.constant dense<0.000000e+00> : vector<16x16xf32>
    %132 = tpu.matmul %3, %131, %cst_64 {dimension_numbers = #tpu.dot_dimension_numbers<[1], [0], [0], [1], [0, 0, 1, 1], [], []>} : vector<16x48xbf16>, vector<48x16xbf16>, vector<16x16xf32> -> vector<16x16xf32>
    %133 = vector.broadcast %4 : vector<16x1xf32> to vector<16x16xf32>
    %134 = arith.addf %132, %133 : vector<16x16xf32>
    %cst_65 = arith.constant 0.000000e+00 : f32
    %135 = vector.broadcast %cst_65 : f32 to vector<16x16xf32>
    %136 = arith.maximumf %134, %135 : vector<16x16xf32>
    %137 = arith.truncf %136 : vector<16x16xf32> to vector<16x16xbf16>
    %cst_66 = arith.constant dense<0.000000e+00> : vector<64x16xf32>
    %138 = tpu.matmul %5, %137, %cst_66 {dimension_numbers = #tpu.dot_dimension_numbers<[1], [0], [0], [1], [0, 0, 1, 1], [], []>} : vector<64x16xbf16>, vector<16x16xbf16>, vector<64x16xf32> -> vector<64x16xf32>
    %139 = vector.broadcast %6 : vector<64x1xf32> to vector<64x16xf32>
    %140 = arith.addf %138, %139 : vector<64x16xf32>
    %cst_67 = arith.constant 0.000000e+00 : f32
    %141 = vector.broadcast %cst_67 : f32 to vector<64x16xf32>
    %142 = arith.maximumf %140, %141 : vector<64x16xf32>
    %143 = tpu.iota {dimensions = array<i32: 1>} : vector<64x16xi32>
    %c0_i32_68 = arith.constant 0 : i32
    %144 = vector.broadcast %c0_i32_68 : i32 to vector<64x16xi32>
    %145 = arith.cmpi eq, %143, %144 : vector<64x16xi32>
    %c1_i32_69 = arith.constant 1 : i32
    %146 = tpu.dynamic_rotate %142 by %c1_i32_69 dim 1 : vector<64x16xf32>, i32 -> vector<64x16xf32>
    %cst_70 = arith.constant 0.000000e+00 : f32
    %147 = vector.broadcast %cst_70 : f32 to vector<64x16xf32>
    %148 = arith.select %145, %147, %146 : vector<64x16xi1>, vector<64x16xf32>
    %c15_i32_71 = arith.constant 15 : i32
    %149 = vector.broadcast %c15_i32_71 : i32 to vector<64x16xi32>
    %150 = arith.cmpi eq, %143, %149 : vector<64x16xi32>
    %c15_i32_72 = arith.constant 15 : i32
    %151 = tpu.dynamic_rotate %142 by %c15_i32_72 dim 1 : vector<64x16xf32>, i32 -> vector<64x16xf32>
    %cst_73 = arith.constant 0.000000e+00 : f32
    %152 = vector.broadcast %cst_73 : f32 to vector<64x16xf32>
    %153 = arith.select %150, %152, %151 : vector<64x16xi1>, vector<64x16xf32>
    %154 = vector.extract_strided_slice %7 {offsets = [0, 0], sizes = [64, 1], strides = [1, 1]} : vector<64x3xf32> to vector<64x1xf32>
    %155 = vector.broadcast %154 : vector<64x1xf32> to vector<64x16xf32>
    %156 = arith.mulf %148, %155 : vector<64x16xf32>
    %157 = vector.extract_strided_slice %7 {offsets = [0, 1], sizes = [64, 1], strides = [1, 1]} : vector<64x3xf32> to vector<64x1xf32>
    %158 = vector.broadcast %157 : vector<64x1xf32> to vector<64x16xf32>
    %159 = arith.mulf %142, %158 : vector<64x16xf32>
    %160 = arith.addf %156, %159 : vector<64x16xf32>
    %161 = vector.extract_strided_slice %7 {offsets = [0, 2], sizes = [64, 1], strides = [1, 1]} : vector<64x3xf32> to vector<64x1xf32>
    %162 = vector.broadcast %161 : vector<64x1xf32> to vector<64x16xf32>
    %163 = arith.mulf %153, %162 : vector<64x16xf32>
    %164 = arith.addf %160, %163 : vector<64x16xf32>
    %cst_74 = arith.constant 0.000000e+00 : f32
    %165 = vector.broadcast %cst_74 : f32 to vector<64x16xf32>
    %166 = arith.maximumf %164, %165 : vector<64x16xf32>
    %cst_75 = arith.constant dense<0.000000e+00> : vector<64xf32>
    %167 = vector.multi_reduction <add>, %166, %cst_75 [1] : vector<64x16xf32> to vector<64xf32>
    %168 = vector.shape_cast %167 : vector<64xf32> to vector<64x1xf32>
    %cst_76 = arith.constant 1.600000e+01 : f32
    %169 = vector.broadcast %cst_76 : f32 to vector<64x1xf32>
    %170 = arith.divf %168, %169 : vector<64x1xf32>
    %cst_77 = arith.constant dense<0xFF800000> : vector<64xf32>
    %171 = vector.multi_reduction <maximumf>, %166, %cst_77 [1] : vector<64x16xf32> to vector<64xf32>
    %172 = vector.shape_cast %171 : vector<64xf32> to vector<64x1xf32>
    %173 = tpu.concatenate %170, %172 in 1 : vector<64x1xf32>, vector<64x1xf32> -> vector<64x2xf32>
    %174 = arith.truncf %173 : vector<64x2xf32> to vector<64x2xbf16>
    %cst_78 = arith.constant dense<0.000000e+00> : vector<4x2xf32>
    %175 = tpu.matmul %8, %174, %cst_78 {dimension_numbers = #tpu.dot_dimension_numbers<[1], [0], [0], [1], [0, 0, 1, 1], [], []>} : vector<4x64xbf16>, vector<64x2xbf16>, vector<4x2xf32> -> vector<4x2xf32>
    %176 = vector.broadcast %9 : vector<4x1xf32> to vector<4x2xf32>
    %177 = arith.addf %175, %176 : vector<4x2xf32>
    %cst_79 = arith.constant 0.000000e+00 : f32
    %178 = vector.broadcast %cst_79 : f32 to vector<4x2xf32>
    %179 = arith.maximumf %177, %178 : vector<4x2xf32>
    %180 = arith.truncf %179 : vector<4x2xf32> to vector<4x2xbf16>
    %cst_80 = arith.constant dense<0.000000e+00> : vector<64x2xf32>
    %181 = tpu.matmul %10, %180, %cst_80 {dimension_numbers = #tpu.dot_dimension_numbers<[1], [0], [0], [1], [0, 0, 1, 1], [], []>} : vector<64x4xbf16>, vector<4x2xbf16>, vector<64x2xf32> -> vector<64x2xf32>
    %182 = vector.broadcast %11 : vector<64x1xf32> to vector<64x2xf32>
    %183 = arith.addf %181, %182 : vector<64x2xf32>
    %184 = vector.extract_strided_slice %183 {offsets = [0, 0], sizes = [64, 1], strides = [1, 1]} : vector<64x2xf32> to vector<64x1xf32>
    %185 = vector.extract_strided_slice %183 {offsets = [0, 1], sizes = [64, 1], strides = [1, 1]} : vector<64x2xf32> to vector<64x1xf32>
    %186 = arith.addf %184, %185 : vector<64x1xf32>
    %cst_81 = arith.constant 0.000000e+00 : f32
    %187 = vector.broadcast %cst_81 : f32 to vector<64x1xf32>
    %188 = arith.subf %187, %186 : vector<64x1xf32>
    %189 = math.exp %188 : vector<64x1xf32>
    %cst_82 = arith.constant 1.000000e+00 : f32
    %190 = vector.broadcast %cst_82 : f32 to vector<64x1xf32>
    %191 = arith.addf %190, %189 : vector<64x1xf32>
    %cst_83 = arith.constant 1.000000e+00 : f32
    %192 = vector.broadcast %cst_83 : f32 to vector<64x1xf32>
    %193 = arith.divf %192, %191 : vector<64x1xf32>
    %194 = vector.broadcast %193 : vector<64x1xf32> to vector<64x16xf32>
    %195 = arith.mulf %166, %194 : vector<64x16xf32>
    %196 = arith.addf %195, %118 : vector<64x16xf32>
    %cst_84 = arith.constant 0.000000e+00 : f32
    %197 = vector.broadcast %cst_84 : f32 to vector<64x16xf32>
    %198 = arith.maximumf %196, %197 : vector<64x16xf32>
    %c1_85 = arith.constant 1 : index
    %c0_86 = arith.constant 0 : index
    %c0_87 = arith.constant 0 : index
    %199 = vector.load %arg14[%c1_85, %c0_86, %c0_87] : memref<2x64x16xf32, #tpu.memory_space<vmem>>, vector<1x64x16xf32>
    %200 = vector.shape_cast %199 : vector<1x64x16xf32> to vector<64x16xf32>
    %201 = vector.shape_cast %198 : vector<64x16xf32> to vector<1x64x16xf32>
    tpu.vector_store %arg14[%c1_85, %c0_86, %c0_87], %201 {strides = array<i32>} : memref<2x64x16xf32, #tpu.memory_space<vmem>>, vector<1x64x16xf32>,
    return
  }
  func.func @transform_0(%arg0: i32) -> (i32, i32, i32) {
    %c0_i32 = arith.constant 0 : i32
    %c0_i32_0 = arith.constant 0 : i32
    %c0_i32_1 = arith.constant 0 : i32
    return %arg0, %c0_i32, %c0_i32_0 : i32, i32, i32
  }
  func.func @transform_1(%arg0: i32) -> (i32, i32) {
    %c0_i32 = arith.constant 0 : i32
    %c0_i32_0 = arith.constant 0 : i32
    %c0_i32_1 = arith.constant 0 : i32
    return %c0_i32, %c0_i32_0 : i32, i32
  }
  func.func @transform_2(%arg0: i32) -> (i32, i32) {
    %c0_i32 = arith.constant 0 : i32
    %c0_i32_0 = arith.constant 0 : i32
    %c0_i32_1 = arith.constant 0 : i32
    return %c0_i32, %c0_i32_0 : i32, i32
  }
  func.func @transform_3(%arg0: i32) -> (i32, i32) {
    %c0_i32 = arith.constant 0 : i32
    %c0_i32_0 = arith.constant 0 : i32
    %c0_i32_1 = arith.constant 0 : i32
    return %c0_i32, %c0_i32_0 : i32, i32
  }
  func.func @transform_4(%arg0: i32) -> (i32, i32) {
    %c0_i32 = arith.constant 0 : i32
    %c0_i32_0 = arith.constant 0 : i32
    %c0_i32_1 = arith.constant 0 : i32
    return %c0_i32, %c0_i32_0 : i32, i32
  }
  func.func @transform_5(%arg0: i32) -> (i32, i32) {
    %c0_i32 = arith.constant 0 : i32
    %c0_i32_0 = arith.constant 0 : i32
    %c0_i32_1 = arith.constant 0 : i32
    return %c0_i32, %c0_i32_0 : i32, i32
  }
  func.func @transform_6(%arg0: i32) -> (i32, i32) {
    %c0_i32 = arith.constant 0 : i32
    %c0_i32_0 = arith.constant 0 : i32
    %c0_i32_1 = arith.constant 0 : i32
    return %c0_i32, %c0_i32_0 : i32, i32
  }
  func.func @transform_7(%arg0: i32) -> (i32, i32) {
    %c0_i32 = arith.constant 0 : i32
    %c0_i32_0 = arith.constant 0 : i32
    %c0_i32_1 = arith.constant 0 : i32
    return %c0_i32, %c0_i32_0 : i32, i32
  }
  func.func @transform_8(%arg0: i32) -> (i32, i32) {
    %c0_i32 = arith.constant 0 : i32
    %c0_i32_0 = arith.constant 0 : i32
    %c0_i32_1 = arith.constant 0 : i32
    return %c0_i32, %c0_i32_0 : i32, i32
  }
  func.func @transform_9(%arg0: i32) -> (i32, i32) {
    %c0_i32 = arith.constant 0 : i32
    %c0_i32_0 = arith.constant 0 : i32
    %c0_i32_1 = arith.constant 0 : i32
    return %c0_i32, %c0_i32_0 : i32, i32
  }
  func.func @transform_10(%arg0: i32) -> (i32, i32) {
    %c0_i32 = arith.constant 0 : i32
    %c0_i32_0 = arith.constant 0 : i32
    %c0_i32_1 = arith.constant 0 : i32
    return %c0_i32, %c0_i32_0 : i32, i32
  }
  func.func @transform_11(%arg0: i32) -> (i32, i32) {
    %c0_i32 = arith.constant 0 : i32
    %c0_i32_0 = arith.constant 0 : i32
    %c0_i32_1 = arith.constant 0 : i32
    return %c0_i32, %c0_i32_0 : i32, i32
  }
  func.func @transform_12(%arg0: i32) -> (i32, i32) {
    %c0_i32 = arith.constant 0 : i32
    %c0_i32_0 = arith.constant 0 : i32
    %c0_i32_1 = arith.constant 0 : i32
    return %c0_i32, %c0_i32_0 : i32, i32
  }
  func.func @transform_13(%arg0: i32) -> (i32, i32, i32) {
    %c0_i32 = arith.constant 0 : i32
    %c0_i32_0 = arith.constant 0 : i32
    %c0_i32_1 = arith.constant 0 : i32
    return %arg0, %c0_i32, %c0_i32_0 : i32, i32, i32
  }
}

</mosaic_0001>

<bundles_post_ra>
// kernel: qblock_forward.1
= control target key start
LH: loop header
LB: loop body
LE: loop exit
PB: predicated region body
PF: predicated region fallthrough
CT: control target
= control target key end

     0   :  { %18 = vsyncpa [#allocation3], 0  ;;  %s3922_s0 = inlined_call_operand.hbm [shape: f32[2,16,16], index: 0, kind: input, shape index: {}]   ;;  %s3923_s1 = inlined_call_operand.hbm [shape: bf16[80,16], index: 1, kind: input, shape index: {}]   ;;  %s3924_s2 = inlined_call_operand.hbm [shape: f32[16,1], index: 2, kind: input, shape index: {}]   ;;  %s3925_s3 = inlined_call_operand.hbm [shape: f32[64,1], index: 3, kind: input, shape index: {}]   ;;  %s3926_s4 = inlined_call_operand.vmem [shape: bf16[16,48], index: 4, kind: input, shape index: {}]   ;;  %s3927_s5 = inlined_call_operand.hbm [shape: f32[16,1], index: 5, kind: input, shape index: {}]   ;;  %s3928_s6 = inlined_call_operand.hbm [shape: bf16[64,16], index: 6, kind: input, shape index: {}]   ;;  %s3929_s7 = inlined_call_operand.hbm [shape: f32[64,1], index: 7, kind: input, shape index: {}]   ;;  %s3930_s8 = inlined_call_operand.hbm [shape: f32[64,3], index: 8, kind: input, shape index: {}]   ;;  %s3931_s9 = inlined_call_operand.vmem [shape: bf16[4,64], index: 9, kind: input, shape index: {}]   ;;  %s3932_s10 = inlined_call_operand.hbm [shape: f32[4,1], index: 10, kind: input, shape index: {}]   ;;  %s3933_s11 = inlined_call_operand.hbm [shape: bf16[64,4], index: 11, kind: input, shape index: {}]   ;;  %s3934_s12 = inlined_call_operand.hbm [shape: f32[64,1], index: 12, kind: input, shape index: {}]   ;;  %s3935_s13 = inlined_call_operand.vmem [shape: f32[2,64,16], index: 13, kind: output, shape index: {}]  }
   0x1   :  { %19 = vsyncpa [#allocation5], 0 }
   0x2   :  { %20 = vsyncpa [#allocation8], 0 }
   0x3   :  { %21 = vsyncpa [#allocation11], 0 }
   0x4   :  { %22 = vsyncpa [#allocation14], 0 }
   0x5   :  { %23 = vsyncpa [#allocation17], 0  ;;  %s2776_s25 = smov [#allocation4]  }
   0x6   :  { %s41_s26 = sshll.u32 %s2776_s25, 4  ;;  %s42_s26 = int_to_ptr.vmem [resolvable:$true] %s41_s26 }
   0x7   :  { %s2552_s27 = scalar_lea.vmem %s42_s26, 640  ;;  %p2557_p1 = scmp.lt.s32.totalorder %s42_s26, %s42_s26 }
   0x8   :  { %p2553_p0 = scmp.ne.s32.totalorder %s42_s26, %s2552_s27  ;;  %p2558_p2 = scmp.lt.s32.totalorder %s2552_s27, %s2552_s27 }
   0xa   :  { %p2559_p3 = por %p2558_p2, %p2557_p1 }
   0xc   :  { %p2560_p4 = pnand %p2559_p3, %p2553_p0 }
   0xe   :  { %2563 = shalt.err (!%p2560_p4)
}
   0xf   :  { %s2777_s28 = smov 64   ;;  %s2778_s29 = smov 4  }
  0x10   :  { %47 = dma.hbm_to_vmem [thread:$0]  %s3923_s1, 640, %s42_s26, [#allocation5], %s2777_s28, %s2777_s28, %s2778_s29  }
  0x11   :  { %s2779_s15 = smov [#allocation7]   ;;  %s2780_s17 = smov [#allocation10]  }
  0x12   :  { %s65_s16 = sshll.u32 %s2779_s15, 4  ;;  %s91_s18 = sshll.u32 %s2780_s17, 4  ;;  %s66_s16 = int_to_ptr.vmem [resolvable:$true] %s65_s16  ;;  %s92_s18 = int_to_ptr.vmem [resolvable:$true] %s91_s18 }
  0x13   :  { %s2572_s19 = scalar_lea.vmem %s66_s16, 1024  ;;  %p2577_p6 = scmp.lt.s32.totalorder %s66_s16, %s66_s16 }
  0x14   :  { %p2573_p5 = scmp.ne.s32.totalorder %s66_s16, %s2572_s19  ;;  %p2578_p7 = scmp.lt.s32.totalorder %s2572_s19, %s2572_s19 }
  0x16   :  { %p2579_p8 = por %p2578_p7, %p2577_p6 }
  0x18   :  { %p2580_p9 = pnand %p2579_p8, %p2573_p5 }
  0x1a   :  { %2583 = shalt.err (!%p2580_p9)
}
  0x1b   :  { %s2781_s20 = smov 128   ;;  %s2782_s21 = smov 8  }
  0x1c   :  { %71 = dma.hbm_to_vmem [thread:$0]  %s3925_s3, 1024, %s66_s16, [#allocation8], %s2781_s20, %s2781_s20, %s2782_s21  }
  0x1d   :  { %s2592_s1 = scalar_lea.vmem %s92_s18, 512  ;;  %p2597_p11 = scmp.lt.s32.totalorder %s92_s18, %s92_s18 }
  0x1e   :  { %p2593_p10 = scmp.ne.s32.totalorder %s92_s18, %s2592_s1  ;;  %p2598_p12 = scmp.lt.s32.totalorder %s2592_s1, %s2592_s1 }
  0x20   :  { %p2599_p13 = por %p2598_p12, %p2597_p11 }
  0x22   :  { %p2600_p0 = pnand %p2599_p13, %p2593_p10 }
  0x24   :  { %2603 = shalt.err (!%p2600_p0)
}
  0x25   :  { %97 = dma.hbm_to_vmem [thread:$0]  %s3928_s6, 512, %s92_s18, [#allocation11], %s2777_s28, %s2777_s28, %s2778_s29  }
  0x26   :  { %s2783_s26 = smov [#allocation13]   ;;  %s2784_s30 = smov [#allocation16]  }
  0x27   :  { %s115_s27 = sshll.u32 %s2783_s26, 4  ;;  %s139_s3 = sshll.u32 %s2784_s30, 4  ;;  %s116_s27 = int_to_ptr.vmem [resolvable:$true] %s115_s27  ;;  %s140_s3 = int_to_ptr.vmem [resolvable:$true] %s139_s3 }
  0x28   :  { %s2612_s14 = scalar_lea.vmem %s116_s27, 1024  ;;  %p2617_p2 = scmp.lt.s32.totalorder %s116_s27, %s116_s27 }
  0x29   :  { %p2613_p1 = scmp.ne.s32.totalorder %s116_s27, %s2612_s14  ;;  %p2618_p3 = scmp.lt.s32.totalorder %s2612_s14, %s2612_s14 }
  0x2b   :  { %p2619_p4 = por %p2618_p3, %p2617_p2 }
  0x2d   :  { %p2620_p5 = pnand %p2619_p4, %p2613_p1 }
  0x2f   :  { %2623 = shalt.err (!%p2620_p5)
}
  0x30   :  { %121 = dma.hbm_to_vmem [thread:$0]  %s3930_s8, 1024, %s116_s27, [#allocation14], %s2781_s20, %s2781_s20, %s2782_s21  }
  0x31   :  { %s2632_s6 = scalar_lea.vmem %s140_s3, 512  ;;  %p2637_p7 = scmp.lt.s32.totalorder %s140_s3, %s140_s3 }
  0x32   :  { %p2633_p6 = scmp.ne.s32.totalorder %s140_s3, %s2632_s6  ;;  %p2638_p8 = scmp.lt.s32.totalorder %s2632_s6, %s2632_s6 }
  0x34   :  { %p2639_p9 = por %p2638_p8, %p2637_p7 }
  0x36   :  { %p2640_p10 = pnand %p2639_p9, %p2633_p6 }
  0x38   :  { %2643 = shalt.err (!%p2640_p10)
}
  0x39   :  { %145 = dma.hbm_to_vmem [thread:$0]  %s3933_s11, 512, %s140_s3, [#allocation17], %s2777_s28, %s2777_s28, %s2778_s29  }
  0x3a   :  { %s2785_s19 = smov [#allocation2]   ;;  %s2786_s23 = smov [#allocation6]  }
  0x3b   :  { %s29_s22 = sshll.u32 %s2785_s19, 4  ;;  %s53_s8 = sshll.u32 %s2786_s23, 4  ;;  %s30_s22 = int_to_ptr.vmem [resolvable:$true] %s29_s22  ;;  %s54_s8 = int_to_ptr.vmem [resolvable:$true] %s53_s8 }
  0x3c   :  { %s2652_s1 = scalar_lea.vmem %s30_s22, 512  ;;  %p2657_p12 = scmp.lt.s32.totalorder %s30_s22, %s30_s22 }
  0x3d   :  { %p2653_p11 = scmp.ne.s32.totalorder %s30_s22, %s2652_s1  ;;  %p2658_p13 = scmp.lt.s32.totalorder %s2652_s1, %s2652_s1 }
  0x3f   :  { %p2659_p0 = por %p2658_p13, %p2657_p12 }
  0x41   :  { %p2660_p1 = pnand %p2659_p0, %p2653_p11 }
  0x43   :  { %2663 = shalt.err (!%p2660_p1)
}
  0x44   :  { %35 = dma.hbm_to_vmem [thread:$0]  %s3922_s0, 512, %s30_s22, [#allocation3], %s2781_s20, %s2781_s20, %s2782_s21  }
  0x45   :  { %s2672_s11 = scalar_lea.vmem %s54_s8, 256  ;;  %p2677_p3 = scmp.lt.s32.totalorder %s54_s8, %s54_s8 }
  0x46   :  { %p2673_p2 = scmp.ne.s32.totalorder %s54_s8, %s2672_s11  ;;  %p2678_p4 = scmp.lt.s32.totalorder %s2672_s11, %s2672_s11 }
  0x48   :  { %p2679_p5 = por %p2678_p4, %p2677_p3 }
  0x4a   :  { %p2680_p6 = pnand %p2679_p5, %p2673_p2 }
  0x4c   :  { %2683 = shalt.err (!%p2680_p6)
}
  0x4d   :  { %59 = dma.hbm_to_vmem [thread:$0]  %s3924_s2, 256, %s54_s8, [#allocation5], %s2781_s20, %s2781_s20, %s2782_s21  }
  0x4e   :  { %s2787_s26 = smov [#allocation9]   ;;  %s2788_s30 = smov [#allocation12]  }
  0x4f   :  { %s79_s27 = sshll.u32 %s2787_s26, 4  ;;  %s103_s0 = sshll.u32 %s2788_s30, 4  ;;  %s80_s27 = int_to_ptr.vmem [resolvable:$true] %s79_s27  ;;  %s104_s0 = int_to_ptr.vmem [resolvable:$true] %s103_s0 }
  0x50   :  { %s2692_s3 = scalar_lea.vmem %s80_s27, 256  ;;  %p2697_p8 = scmp.lt.s32.totalorder %s80_s27, %s80_s27 }
  0x51   :  { %p2693_p7 = scmp.ne.s32.totalorder %s80_s27, %s2692_s3  ;;  %p2698_p9 = scmp.lt.s32.totalorder %s2692_s3, %s2692_s3 }
  0x53   :  { %p2699_p10 = por %p2698_p9, %p2697_p8 }
  0x55   :  { %p2700_p11 = pnand %p2699_p10, %p2693_p7 }
  0x57   :  { %2703 = shalt.err (!%p2700_p11)
}
  0x58   :  { %85 = dma.hbm_to_vmem [thread:$0]  %s3927_s5, 256, %s80_s27, [#allocation8], %s2781_s20, %s2781_s20, %s2782_s21  }
  0x59   :  { %s2712_s2 = scalar_lea.vmem %s104_s0, 1024  ;;  %p2717_p13 = scmp.lt.s32.totalorder %s104_s0, %s104_s0 }
  0x5a   :  { %p2713_p12 = scmp.ne.s32.totalorder %s104_s0, %s2712_s2  ;;  %p2718_p0 = scmp.lt.s32.totalorder %s2712_s2, %s2712_s2 }
  0x5c   :  { %p2719_p1 = por %p2718_p0, %p2717_p13 }
  0x5e   :  { %p2720_p2 = pnand %p2719_p1, %p2713_p12 }
  0x60   :  { %2723 = shalt.err (!%p2720_p2)
}
  0x61   :  { %109 = dma.hbm_to_vmem [thread:$0]  %s3929_s7, 1024, %s104_s0, [#allocation11], %s2781_s20, %s2781_s20, %s2782_s21  }
  0x62   :  { %s2789_s17 = smov [#allocation15]   ;;  %s2790_s19 = smov [#allocation18]  }
  0x63   :  { %s130_s18 = sshll.u32 %s2789_s17, 4  ;;  %s151_s5 = sshll.u32 %s2790_s19, 4  ;;  %s131_s18 = int_to_ptr.vmem [resolvable:$true] %s130_s18  ;;  %s152_s5 = int_to_ptr.vmem [resolvable:$true] %s151_s5 }
  0x64   :  { %s2732_s22 = scalar_lea.vmem %s131_s18, 64  ;;  %p2737_p4 = scmp.lt.s32.totalorder %s131_s18, %s131_s18 }
  0x65   :  { %p2733_p3 = scmp.ne.s32.totalorder %s131_s18, %s2732_s22  ;;  %p2738_p5 = scmp.lt.s32.totalorder %s2732_s22, %s2732_s22 }
  0x67   :  { %p2739_p6 = por %p2738_p5, %p2737_p4 }
  0x69   :  { %p2740_p7 = pnand %p2739_p6, %p2733_p3 }
  0x6b   :  { %2743 = shalt.err (!%p2740_p7)
}
  0x6c   :  { %133 = dma.hbm_to_vmem [thread:$0]  %s3932_s10, 64, %s131_s18, [#allocation14]  }
  0x6d   :  { %s2752_s1 = scalar_lea.vmem %s152_s5, 1024  ;;  %p2757_p9 = scmp.lt.s32.totalorder %s152_s5, %s152_s5 }
  0x6e   :  { %p2753_p8 = scmp.ne.s32.totalorder %s152_s5, %s2752_s1  ;;  %p2758_p10 = scmp.lt.s32.totalorder %s2752_s1, %s2752_s1 }
  0x70   :  { %p2759_p11 = por %p2758_p10, %p2757_p9 }
  0x72   :  { %p2760_p12 = pnand %p2759_p11, %p2753_p8 }
  0x74   :  { %2763 = shalt.err (!%p2760_p12)
}
  0x75   :  { %157 = dma.hbm_to_vmem [thread:$0]  %s3934_s12, 1024, %s152_s5, [#allocation17], %s2781_s20, %s2781_s20, %s2782_s21  }
  0x76   :  { %2764 = dma.done.wait [#allocation3], 512  }
  0x77   :  { %2765 = vsyncadd [#allocation3], 4294966784 }
  0x78   :  { %2766 = dma.done.wait [#allocation5], 896  }
  0x79   :  { %2767 = vsyncadd [#allocation5], 4294966400 }
  0x7a   :  { %2768 = dma.done.wait [#allocation8], 1280  }
  0x7b   :  { %2769 = vsyncadd [#allocation8], 4294966016 }
  0x7c   :  { %2770 = dma.done.wait [#allocation11], 1536  }
  0x7d   :  { %2771 = vsyncadd [#allocation11], 4294965760 }
  0x7e   :  { %2772 = dma.done.wait [#allocation14], 1088  }
  0x7f   :  { %2773 = vsyncadd [#allocation14], 4294966208 }
  0x80   :  { %2774 = dma.done.wait [#allocation17], 1536  }
  0x81   :  { %2775 = vsyncadd [#allocation17], 4294965760  ;;  %v3936_v0 = vmov 0.0   ;;  %vm2792_vm0 = vmmov 0   ;;  %v2793_v1 = vmov 0   ;;  %v258_v2 = vld [vmem:[#allocation2] sm:$0xff]  ;;  %v437_v41 = vlaneseq }
  0x82   :  { %2256 = vmatprep.subr.bf16.mxu0 %v3936_v0  ;;  %2258 = vmatprep.mubr.msk.bf16.mxu0 %vm2792_vm0, %v3936_v0  ;;  %v259_v3 = vld [vmem:[#allocation2 + $0x8] sm:$0xff]  ;;  %v2940_v5 = vld [vmem:[#allocation4] sm:$0xff]   ;;  %vm286_vm1 = vcmask 130048   ;;  %v203_v7 = vld [vmem:[#allocation6 + $0x8] sm:$0xff]  ;;  %s2794_s10 = smov 16   ;;  %vm440_vm2 = vcmask 1047680  }
  0x83   :  { %2409 = vset.pattern.permute.xlu0 %v2793_v1  ;;  %2278 = vmatprep.subr.bf16.mxu1 %v3936_v0  ;;  %v260_v4 = vpack.c.bf16 %v259_v3, %v258_v2  ;;  %v202_v6 = vld [vmem:[#allocation6] sm:$0xff]  ;;  %s2795_s12 = smov 113   ;;  %s2796_s20 = smov 127   ;;  %v214_v31 = vld [vmem:[#allocation9] sm:$0xff]  ;;  %v215_v35 = vld [vmem:[#allocation9 + $0x8] sm:$0xff]  ;;  %v2960_v42 = vand.u32 127, %v437_v41 }
  0x84   :  { %2284 = vmatprep.mubr.msk.bf16.mxu1 %vm2792_vm0, %v3936_v0  ;;  %2430 = vset.pattern.permute.xlu1 %v2793_v1  ;;  %v230_v32 = vld [vmem:[#allocation12 + $0x30] sm:$0xff]  ;;  %v228_v33 = vld [vmem:[#allocation12 + $0x20] sm:$0xff]  ;;  %v231_v37 = vld [vmem:[#allocation12 + $0x38] sm:$0xff]  ;;  %vm490_vm9 = vcmask 392192   ;;  %vm1012_vm10 = vcmask 7168   ;;  %vm1030_vm11 = vcmask 523264  }
  0x85   :  { %377 = vperm.xlu0 %2409, %v202_v6   ;;  %2257 = vmatpush3.bf16.msra.mxu0 %v260_v4  ;;  %v226_v34 = vld [vmem:[#allocation12 + $0x10] sm:$0xff]  ;;  %v224_v36 = vld [vmem:[#allocation12] sm:$0xff]  ;;  %v229_v38 = vld [vmem:[#allocation12 + $0x28] sm:$0xff]  ;;  %vm463_vm3 = vcmp.eq.s32.totalorder %v2960_v42, 15  ;;  %vm439_vm6 = vcmp.eq.s32.totalorder %v2960_v42, 0  ;;  %vm1136_vm12 = vcmask 31744  }
  0x86   :  { %v227_v39 = vld [vmem:[#allocation12 + $0x18] sm:$0xff]  ;;  %v225_v40 = vld [vmem:[#allocation12 + $0x8] sm:$0xff]  ;;  %vm2965_vm4 = vmneg %vm463_vm3  ;;  %vm1149_vm13 = vcmask 1041408  }
  0x87   :  { %vm2147_vm5 = vmpackc.low %vm2965_vm4, %vm2965_vm4  ;;  %v2992_v54 = vld [vmem:[%s3926_s4] sm:$0xff]   ;;  %v3001_v55 = vld [vmem:[#allocation10] sm:$0xff]  }
  0x88   :  { %2259 = vmatmul.mubr.msk.bf16.vlgmr.msra.gmra.mxu0 %vm286_vm1, %v2940_v5  ;;  %vm2981_vm7 = vmneg %vm439_vm6  ;;  %v3011_v6 = vld [vmem:[#allocation10 + $0x8] sm:$0xff]  }
  0x89   :  { %382 = vperm.xlu0 %2409, %v203_v7   ;;  %2262 = vmatprep.mubr.msk.bf16.mxu0 %vm2792_vm0, %v3936_v0  ;;  %vm2152_vm8 = vmpackc.low %vm2981_vm7, %vm2981_vm7  ;;  %v3013_v7 = vld [vmem:[#allocation10 + $0x10] sm:$0xff]  }
 0x100   :  { %v2946_v8 = vpop.permute.xlu0 %377 }
 0x104   :  { %v2949_v12 = vpop.permute.xlu0 %382 }
 0x148   :  { %v336_v9 = vpop.f32.mrf.mxu0 }
 0x149   :  { %v385_v11 = vadd.f32 %v2946_v8, %v336_v9  ;;  %v3020_v9 = vld [vmem:[#allocation10 + $0x18] sm:$0xff]  }
 0x14a   :  { %v2260_v10 = vpop.f32.mrf.mxu0 }
 0x14b   :  { %v387_v16 = vmax.f32 %v385_v11, 0.0 }
 0x14c   :  { %v339_v13 = vpop.f32.mrf.mxu0 }
 0x14d   :  { %v386_v14 = vadd.f32 %v2949_v12, %v339_v13 }
 0x14e   :  { %v2261_v15 = vpop.f32.mrf.mxu0 }
 0x14f   :  { %v388_v17 = vmax.f32 %v386_v14, 0.0 }
 0x151   :  { %v2410_v18 = vpack.i.bf16 %v388_v17, %v387_v16  ;;  %v473_v51 = vpack.c.bf16 %v388_v17, %v387_v16 }
 0x153   :  { %2411 = vrot.lane.b32.xlu1 %v2410_v18, %s2794_s10 }
 0x1c5   :  { %v2412_v19 = vpop.permute.xlu1 %2411 }
 0x1c6   :  { %v2414_v20 = vunpack.i.h.bf16 %v2412_v19  ;;  %v2413_v21 = vunpack.i.l.bf16 %v2412_v19 }
 0x1c8   :  { %v443_v22 = vsel %vm440_vm2, %v2413_v21, %v387_v16  ;;  %v446_v23 = vsel %vm440_vm2, %v2414_v20, %v388_v17 }
 0x1c9   :  { %v2415_v24 = vpack.i.bf16 %v446_v23, %v443_v22 }
 0x1cb   :  { %2416 = vrot.lane.b32.xlu1 %v2415_v24, %s2794_s10 }
 0x23d   :  { %v2417_v25 = vpop.permute.xlu1 %2416 }
 0x23e   :  { %v2419_v26 = vunpack.i.h.bf16 %v2417_v25  ;;  %v2418_v27 = vunpack.i.l.bf16 %v2417_v25 }
 0x240   :  { %v451_v28 = vsel %vm440_vm2, %v2418_v27, %v387_v16  ;;  %v452_v29 = vsel %vm440_vm2, %v2419_v26, %v388_v17 }
 0x241   :  { %v2425_v30 = vpack.i.bf16 %v452_v29, %v451_v28 }
 0x243   :  { %2426 = vrot.lane.b32.xlu1 %v2425_v30, %s2795_s12  ;;  %2421 = vrot.lane.b32.xlu0 %v2425_v30, %s2796_s20 }
 0x247   :  { %477 = vperm.xlu0 %2409, %v214_v31   ;;  %482 = vperm.xlu1 %2430, %v215_v35  }
 0x24b   :  { %570 = vperm.xlu0 %2409, %v230_v32   ;;  %575 = vperm.xlu1 %2430, %v231_v37  }
 0x24f   :  { %560 = vperm.xlu0 %2409, %v228_v33   ;;  %565 = vperm.xlu1 %2430, %v229_v38  }
 0x253   :  { %550 = vperm.xlu0 %2409, %v226_v34   ;;  %555 = vperm.xlu1 %2430, %v227_v39   ;;  %v2797_v34 = vmov 1  }
 0x257   :  { %540 = vperm.xlu0 %2409, %v224_v36   ;;  %545 = vperm.xlu1 %2430, %v225_v40  }
 0x25b   :  { %2431 = vset.pattern.permute.xlu0 %v2797_v34 }
 0x2b5   :  { %v2422_v44 = vpop.permute.xlu0 %2421  ;;  %v2427_v48 = vpop.permute.xlu1 %2426 }
 0x2b6   :  { %v2424_v45 = vunpack.i.h.bf16 %v2422_v44  ;;  %v2423_v46 = vunpack.i.l.bf16 %v2422_v44  ;;  %v2429_v49 = vunpack.i.h.bf16 %v2427_v48  ;;  %v2428_v50 = vunpack.i.l.bf16 %v2427_v48 }
 0x2b8   :  { %v2148_v47 = vpack.c.bf16 %v2424_v45, %v2423_v46  ;;  %v2153_v53 = vpack.c.bf16 %v2429_v49, %v2428_v50  ;;  %v239_v46 = vld [vmem:[#allocation13 + $0x38] sm:$0xff] }
 0x2ba   :  { %2279 = vmatpush3.bf16.msk.msra.mxu1 %vm2147_vm5, %v2148_v47 }
 0x2bb   :  { %2280 = vmatprep.subr.bf16.mxu1 %v3936_v0 }
 0x2be   :  { %2281 = vmatpush3.bf16.msra.mxu1 %v473_v51 }
 0x2bf   :  { %2282 = vmatprep.subr.bf16.mxu1 %v3936_v0 }
 0x2c2   :  { %2283 = vmatpush3.bf16.msk.msra.mxu1 %vm2152_vm8, %v2153_v53  ;;  %v3005_v57 = vpop.permute.xlu0 %477  ;;  %v3008_v60 = vpop.permute.xlu1 %482 }
 0x2c5   :  { %2285 = vmatmul.mubr.msk.bf16.vlgmr.msra.gmra.mxu1 %vm490_vm9, %v2992_v54 }
 0x2c6   :  { %2290 = vmatprep.mubr.msk.bf16.mxu1 %vm286_vm1, %v3001_v55  ;;  %v3026_v10 = vpop.permute.xlu0 %570  ;;  %v3028_v14 = vpop.permute.xlu1 %575 }
 0x2ca   :  { %v3030_v16 = vpop.permute.xlu0 %560  ;;  %v3033_v20 = vpop.permute.xlu1 %565 }
 0x2ce   :  { %v3038_v24 = vpop.permute.xlu0 %550  ;;  %v3049_v32 = vpop.permute.xlu1 %555 }
 0x2cf   :  { %3955 = vst [vmem:[#allocation25_spill] sm:$0xff] %v3049_v32 }
 0x2d2   :  { %v3055_v33 = vpop.permute.xlu0 %540  ;;  %v3068_v39 = vpop.permute.xlu1 %545 }
 0x2d3   :  { %3956 = vst [vmem:[#allocation26_spill] sm:$0xff] %v3055_v33  ;;  %3957 = vst [vmem:[#allocation27_spill] sm:$0xff] %v3068_v39 }
 0x385   :  { %v528_v56 = vpop.f32.mrf.mxu1 }
 0x386   :  { %v529_v59 = vadd.f32 %v528_v56, %v3005_v57 }
 0x387   :  { %v2286_v58 = vpop.f32.mrf.mxu1 }
 0x388   :  { %v535_v2 = vmax.f32 %v529_v59, 0.0 }
 0x389   :  { %v531_v61 = vpop.f32.mrf.mxu1 }
 0x38a   :  { %v532_v62 = vadd.f32 %v531_v61, %v3008_v60 }
 0x38b   :  { %v2287_v63 = vpop.f32.mrf.mxu1 }
 0x38c   :  { %v536_v3 = vmax.f32 %v532_v62, 0.0 }
 0x38e   :  { %v537_v4 = vpack.c.bf16 %v536_v3, %v535_v2 }
 0x390   :  { %2288 = vmatprep.subr.bf16.mxu1 %v537_v4 }
 0x391   :  { %2289 = vmatpush3.bf16.msra.mxu1 %v537_v4  ;;  %v238_v4 = vld [vmem:[#allocation13 + $0x30] sm:$0xff] }
 0x392   :  { %2298 = vmatprep.subr.bf16.mxu1 %v3936_v0 }
 0x394   :  { %2291 = vmatmul.mubr.msk.bf16.vlgmr.msra.gmra.mxu1 %vm286_vm1, %v3011_v6 }
 0x395   :  { %2294 = vmatprep.mubr.msk.bf16.mxu1 %vm286_vm1, %v3013_v7 }
 0x39c   :  { %2295 = vmatmul.mubr.msk.bf16.gmra.mxu1 %vm286_vm1, %v3020_v9 }
 0x39d   :  { %2306 = vmatprep.mubr.msk.bf16.mxu1 %vm2792_vm0, %v3936_v0 }
 0x454   :  { %v2292_v11 = vpop.f32.mrf.mxu1 }
 0x455   :  { %v653_v28 = vadd.f32 %v2292_v11, %v3038_v24  ;;  %v2798_v11 = vmov 2  }
 0x456   :  { %v644_v13 = vpop.f32.mrf.mxu1 }
 0x457   :  { %v3058_v35 = vmax.f32 %v653_v28, 0.0  ;;  %v645_v36 = vadd.f32 %v644_v13, %v3055_v33  ;;  %v237_v13 = vld [vmem:[#allocation13 + $0x28] sm:$0xff] }
 0x458   :  { %v2293_v15 = vpop.f32.mrf.mxu1 }
 0x459   :  { %v656_v37 = vadd.f32 %v2293_v15, %v3049_v32  ;;  %v3070_v40 = vmax.f32 %v645_v36, 0.0  ;;  %v236_v15 = vld [vmem:[#allocation13 + $0x20] sm:$0xff] }
 0x45a   :  { %v647_v17 = vpop.f32.mrf.mxu1 }
 0x45b   :  { %v3072_v41 = vmax.f32 %v656_v37, 0.0  ;;  %v648_v44 = vadd.f32 %v647_v17, %v3068_v39  ;;  %v234_v17 = vld [vmem:[#allocation13 + $0x10] sm:$0xff] }
 0x45c   :  { %v2296_v18 = vpop.f32.mrf.mxu1 }
 0x45d   :  { %v669_v19 = vadd.f32 %v2296_v18, %v3026_v10  ;;  %v3079_v45 = vmax.f32 %v648_v44, 0.0 }
 0x45e   :  { %v660_v21 = vpop.f32.mrf.mxu1 }
 0x45f   :  { %v3035_v22 = vmax.f32 %v669_v19, 0.0  ;;  %v661_v23 = vadd.f32 %v660_v21, %v3030_v16  ;;  %v232_v19 = vld [vmem:[#allocation13] sm:$0xff] }
 0x460   :  { %v2297_v25 = vpop.f32.mrf.mxu1 }
 0x461   :  { %v672_v26 = vadd.f32 %v2297_v25, %v3028_v14  ;;  %701 = vrot.lane.b32.xlu0 %v3035_v22, %s2794_s10  ;;  %v3044_v29 = vmax.f32 %v661_v23, 0.0  ;;  %v235_v23 = vld [vmem:[#allocation13 + $0x18] sm:$0xff]  ;;  %v233_v25 = vld [vmem:[#allocation13 + $0x8] sm:$0xff] }
 0x462   :  { %v663_v27 = vpop.f32.mrf.mxu1 }
 0x463   :  { %v3046_v30 = vmax.f32 %v672_v26, 0.0  ;;  %v664_v31 = vadd.f32 %v663_v27, %v3033_v20 }
 0x465   :  { %704 = vrot.lane.b32.xlu1 %v3046_v30, %s2794_s10  ;;  %695 = vrot.lane.b32.xlu0 %v3044_v29, %s2794_s10  ;;  %v3062_v38 = vmax.f32 %v664_v31, 0.0 }
 0x469   :  { %698 = vrot.lane.b32.xlu1 %v3062_v38, %s2794_s10  ;;  %689 = vrot.lane.b32.xlu0 %v3058_v35, %s2794_s10 }
 0x46d   :  { %692 = vrot.lane.b32.xlu1 %v3072_v41, %s2794_s10  ;;  %683 = vrot.lane.b32.xlu0 %v3070_v40, %s2794_s10 }
 0x471   :  { %686 = vrot.lane.b32.xlu1 %v3079_v45, %s2794_s10 }
 0x475   :  { %840 = vperm.xlu1 %2430, %v239_v46  }
 0x479   :  { %2432 = vset.pattern.permute.xlu1 %v2797_v34 }
 0x4d3   :  { %v702_v47 = vpop.permute.xlu0 %701 }
 0x4d4   :  { %v703_v2 = vsel %vm440_vm2, %v702_v47, %v3035_v22 }
 0x4d7   :  { %v705_v48 = vpop.permute.xlu1 %704  ;;  %v696_v49 = vpop.permute.xlu0 %695 }
 0x4d8   :  { %v697_v3 = vsel %vm440_vm2, %v696_v49, %v3044_v29  ;;  %v706_v18 = vsel %vm440_vm2, %v705_v48, %v3046_v30 }
 0x4db   :  { %v699_v50 = vpop.permute.xlu1 %698  ;;  %v690_v51 = vpop.permute.xlu0 %689 }
 0x4dc   :  { %v691_v53 = vsel %vm440_vm2, %v690_v51, %v3058_v35  ;;  %v700_v21 = vsel %vm440_vm2, %v699_v50, %v3062_v38 }
 0x4dd   :  { %711 = vrot.lane.b32.xlu0 %v691_v53, %s2794_s10 }
 0x4df   :  { %v693_v56 = vpop.permute.xlu1 %692  ;;  %v684_v58 = vpop.permute.xlu0 %683 }
 0x4e0   :  { %v694_v59 = vsel %vm440_vm2, %v693_v56, %v3072_v41  ;;  %v685_v61 = vsel %vm440_vm2, %v684_v58, %v3070_v40 }
 0x4e1   :  { %713 = vrot.lane.b32.xlu1 %v694_v59, %s2794_s10  ;;  %707 = vrot.lane.b32.xlu0 %v685_v61, %s2794_s10 }
 0x4e3   :  { %v687_v62 = vpop.permute.xlu1 %686 }
 0x4e4   :  { %v688_v63 = vsel %vm440_vm2, %v687_v62, %v3079_v45 }
 0x4e5   :  { %709 = vrot.lane.b32.xlu1 %v688_v63, %s2794_s10  ;;  %719 = vrot.lane.b32.xlu0 %v703_v2, %s2794_s10 }
 0x4e9   :  { %880 = vperm.xlu1 %2432, %v239_v46   ;;  %715 = vrot.lane.b32.xlu0 %v697_v3, %s2794_s10 }
 0x4ed   :  { %2433 = vset.pattern.permute.xlu1 %v2798_v11  ;;  %876 = vperm.xlu0 %2431, %v238_v4  }
 0x4ee   :  { %924 = vperm.xlu1 %2433, %v238_v4  }
 0x4f0   :  { %v3115_v26 = vpop.permute.xlu1 %840 }
 0x4f1   :  { %872 = vperm.xlu0 %2431, %v237_v13  }
 0x4f2   :  { %2434 = vset.pattern.permute.xlu1 %v2793_v1 }
 0x4f3   :  { %830 = vperm.xlu1 %2434, %v237_v13  }
 0x4f5   :  { %2436 = vset.pattern.permute.xlu0 %v2798_v11 }
 0x4f6   :  { %928 = vperm.xlu0 %2436, %v239_v46  }
 0x4f7   :  { %2435 = vset.pattern.permute.xlu1 %v2797_v34 }
 0x4f8   :  { %868 = vperm.xlu1 %2435, %v236_v15  }
 0x4fa   :  { %916 = vperm.xlu0 %2436, %v236_v15  }
 0x4fc   :  { %2437 = vset.pattern.permute.xlu1 %v2798_v11 }
 0x4fd   :  { %920 = vperm.xlu1 %2437, %v237_v13  }
 0x4fe   :  { %908 = vperm.xlu0 %2436, %v234_v17  }
 0x501   :  { %721 = vrot.lane.b32.xlu1 %v706_v18, %s2794_s10 }
 0x502   :  { %2438 = vset.pattern.permute.xlu1 %v2793_v1  ;;  %900 = vperm.xlu0 %2436, %v232_v19  }
 0x505   :  { %717 = vrot.lane.b32.xlu1 %v700_v21, %s2794_s10 }
 0x506   :  { %2443 = vset.pattern.permute.xlu0 %v2793_v1 }
 0x507   :  { %835 = vperm.xlu0 %2443, %v238_v4  }
 0x509   :  { %815 = vperm.xlu1 %2438, %v234_v17  }
 0x50b   :  { %825 = vperm.xlu0 %2443, %v236_v15  }
 0x50d   :  { %2439 = vset.pattern.permute.xlu1 %v2797_v34 }
 0x50e   :  { %860 = vperm.xlu1 %2439, %v234_v17  }
 0x50f   :  { %820 = vperm.xlu0 %2443, %v235_v23  }
 0x512   :  { %864 = vperm.xlu1 %2439, %v235_v23  }
 0x516   :  { %2440 = vset.pattern.permute.xlu1 %v2798_v11 }
 0x517   :  { %912 = vperm.xlu1 %2440, %v235_v23  }
 0x51b   :  { %2441 = vset.pattern.permute.xlu1 %v2793_v1 }
 0x51c   :  { %805 = vperm.xlu1 %2441, %v232_v19  }
 0x520   :  { %2442 = vset.pattern.permute.xlu1 %v2797_v34 }
 0x521   :  { %852 = vperm.xlu1 %2442, %v232_v19  }
 0x525   :  { %856 = vperm.xlu1 %2442, %v233_v25  }
 0x529   :  { %2444 = vset.pattern.permute.xlu1 %v2798_v11 }
 0x54f   :  { %v712_v27 = vpop.permute.xlu0 %711 }
 0x550   :  { %v725_v28 = vsel %vm440_vm2, %v712_v27, %v3058_v35 }
 0x551   :  { %775 = vrot.lane.b32.xlu0 %v725_v28, %s2796_s20  ;;  %743 = vrot.lane.b32.xlu1 %v725_v28, %s2795_s12 }
 0x553   :  { %v714_v31 = vpop.permute.xlu1 %713  ;;  %v708_v36 = vpop.permute.xlu0 %707 }
 0x554   :  { %v726_v37 = vsel %vm440_vm2, %v714_v31, %v3072_v41  ;;  %v723_v2 = vsel %vm440_vm2, %v708_v36, %v3070_v40 }
 0x555   :  { %745 = vrot.lane.b32.xlu0 %v726_v37, %s2795_s12  ;;  %777 = vrot.lane.b32.xlu1 %v726_v37, %s2796_s20 }
 0x557   :  { %v720_v34 = vpop.permute.xlu0 %719  ;;  %v710_v48 = vpop.permute.xlu1 %709 }
 0x558   :  { %v729_v44 = vsel %vm440_vm2, %v720_v34, %v3035_v22  ;;  %v724_v63 = vsel %vm440_vm2, %v710_v48, %v3079_v45 }
 0x559   :  { %751 = vrot.lane.b32.xlu1 %v729_v44, %s2795_s12 }
 0x55b   :  { %v716_v46 = vpop.permute.xlu0 %715 }
 0x55c   :  { %v727_v47 = vsel %vm440_vm2, %v716_v46, %v3044_v29 }
 0x55d   :  { %783 = vrot.lane.b32.xlu1 %v729_v44, %s2796_s20  ;;  %779 = vrot.lane.b32.xlu0 %v727_v47, %s2796_s20 }
 0x561   :  { %747 = vrot.lane.b32.xlu1 %v727_v47, %s2795_s12 }
 0x564   :  { %v3133_v49 = vpop.permute.xlu1 %880 }
 0x568   :  { %v3159_v3 = vpop.permute.xlu0 %876 }
 0x569   :  { %v3135_v50 = vpop.permute.xlu1 %924  ;;  %v889_v0 = vmul.f32 %v3159_v3, %v3035_v22 }
 0x56c   :  { %v3162_v4 = vpop.permute.xlu0 %872 }
 0x56e   :  { %v3137_v51 = vpop.permute.xlu1 %830 }
 0x571   :  { %v3164_v11 = vpop.permute.xlu0 %928 }
 0x573   :  { %v3139_v53 = vpop.permute.xlu1 %868 }
 0x574   :  { %v887_v22 = vmul.f32 %v3139_v53, %v3044_v29 }
 0x575   :  { %v3168_v15 = vpop.permute.xlu0 %916 }
 0x578   :  { %v3141_v56 = vpop.permute.xlu1 %920 }
 0x579   :  { %v3172_v17 = vpop.permute.xlu0 %908 }
 0x57c   :  { %v722_v58 = vpop.permute.xlu1 %721 }
 0x57d   :  { %v730_v59 = vsel %vm440_vm2, %v722_v58, %v3046_v30  ;;  %v3176_v19 = vpop.permute.xlu0 %900 }
 0x57e   :  { %753 = vrot.lane.b32.xlu1 %v730_v59, %s2795_s12 }
 0x580   :  { %v718_v61 = vpop.permute.xlu1 %717 }
 0x581   :  { %v728_v62 = vsel %vm440_vm2, %v718_v61, %v3062_v38 }
 0x582   :  { %749 = vrot.lane.b32.xlu0 %v728_v62, %s2795_s12  ;;  %785 = vrot.lane.b32.xlu1 %v730_v59, %s2796_s20  ;;  %v3180_v23 = vpop.permute.xlu0 %835 }
 0x584   :  { %v3166_v13 = vpop.permute.xlu1 %815 }
 0x586   :  { %810 = vperm.xlu0 %2443, %v233_v25   ;;  %904 = vperm.xlu1 %2444, %v233_v25   ;;  %v3184_v27 = vpop.permute.xlu0 %825 }
 0x58a   :  { %741 = vrot.lane.b32.xlu0 %v724_v63, %s2795_s12  ;;  %781 = vrot.lane.b32.xlu1 %v728_v62, %s2796_s20  ;;  %v3188_v31 = vpop.permute.xlu0 %820 }
 0x58b   :  { %2455 = vset.pattern.permute.xlu1 %v2793_v1  ;;  %v3170_v1 = vpop.permute.xlu1 %860  ;;  %3959 = vst [vmem:[#allocation29_spill] sm:$0xff] %v3188_v31 }
 0x58e   :  { %773 = vrot.lane.b32.xlu0 %v724_v63, %s2796_s20  ;;  %739 = vrot.lane.b32.xlu1 %v723_v2, %s2795_s12 }
 0x58f   :  { %v3174_v18 = vpop.permute.xlu1 %864 }
 0x590   :  { %3958 = vst [vmem:[#allocation28_spill] sm:$0xff] %v3174_v18  ;;  %v886_v59 = vmul.f32 %v3174_v18, %v3072_v41 }
 0x592   :  { %771 = vrot.lane.b32.xlu1 %v723_v2, %s2796_s20 }
 0x593   :  { %v3178_v21 = vpop.permute.xlu1 %912 }
 0x597   :  { %v3182_v25 = vpop.permute.xlu1 %805 }
 0x59c   :  { %v3186_v28 = vpop.permute.xlu1 %852 }
 0x5a0   :  { %v3190_v36 = vpop.permute.xlu1 %856 }
 0x5c3   :  { %v744_v37 = vpop.permute.xlu1 %743  ;;  %v776_v34 = vpop.permute.xlu0 %775 }
 0x5c7   :  { %v778_v44 = vpop.permute.xlu1 %777  ;;  %v746_v46 = vpop.permute.xlu0 %745 }
 0x5c8   :  { %v766_v47 = vsel %vm439_vm6, 0.0, %v746_v46  ;;  %v798_v62 = vsel %vm463_vm3, 0.0, %v778_v44 }
 0x5c9   :  { %v846_v48 = vmul.f32 %v3188_v31, %v766_v47  ;;  %v934_v46 = vmul.f32 %v3178_v21, %v798_v62 }
 0x5cb   :  { %v752_v58 = vpop.permute.xlu1 %751  ;;  %v894_v2 = vadd.f32 %v886_v59, %v846_v48 }
 0x5cc   :  { %v769_v61 = vsel %vm439_vm6, 0.0, %v752_v58 }
 0x5cd   :  { %v849_v63 = vmul.f32 %v3180_v23, %v769_v61  ;;  %v942_v58 = vadd.f32 %v934_v46, %v894_v2 }
 0x5cf   :  { %v784_v39 = vpop.permute.xlu1 %783  ;;  %v897_v31 = vadd.f32 %v889_v0, %v849_v63  ;;  %v780_v18 = vpop.permute.xlu0 %779  ;;  %v3217_v0 = vmax.f32 %v942_v58, 0.0 }
 0x5d0   :  { %v801_v47 = vsel %vm463_vm3, 0.0, %v784_v39  ;;  %v799_v44 = vsel %vm463_vm3, 0.0, %v780_v18 }
 0x5d1   :  { %v937_v41 = vmul.f32 %v3135_v50, %v801_v47  ;;  %3961 = vst [vmem:[#allocation31_spill] sm:$0xff] %v3217_v0  ;;  %v935_v39 = vmul.f32 %v3168_v15, %v799_v44  ;;  %v964_v29 = vsel %vm286_vm1, %v3217_v0, 0.0  ;;  %v997_v2 = vsel %vm286_vm1, %v3217_v0, -inf }
 0x5d2   :  { %v765_v47 = vsel %vm439_vm6, 0.0, %v744_v37 }
 0x5d3   :  { %v945_v32 = vadd.f32 %v937_v41, %v897_v31  ;;  %v748_v33 = vpop.permute.xlu1 %747  ;;  %v845_v41 = vmul.f32 %v3166_v13, %v765_v47 }
 0x5d4   :  { %v767_v48 = vsel %vm439_vm6, 0.0, %v748_v33 }
 0x5d5   :  { %v847_v59 = vmul.f32 %v3184_v27, %v767_v48  ;;  %v3215_v61 = vmax.f32 %v945_v32, 0.0  ;;  %v885_v48 = vmul.f32 %v3170_v1, %v3058_v35 }
 0x5d7   :  { %3960 = vst [vmem:[#allocation30_spill] sm:$0xff] %v3215_v61  ;;  %v895_v62 = vadd.f32 %v887_v22, %v847_v59  ;;  %v1006_v31 = vsel %vm286_vm1, %v3215_v61, -inf  ;;  %v973_v18 = vsel %vm286_vm1, %v3215_v61, 0.0  ;;  %v797_v59 = vsel %vm463_vm3, 0.0, %v776_v34 }
 0x5d8   :  { %1007 = vmax.xlane.f32.xlu0 %v1006_v31  ;;  %974 = vadd.xlane.f32.xlu1 %v973_v18  ;;  %v933_v18 = vmul.f32 %v3172_v17, %v797_v59 }
 0x5d9   :  { %v943_v33 = vadd.f32 %v935_v39, %v895_v62  ;;  %v890_v39 = vmul.f32 %v3133_v49, %v3046_v30  ;;  %v893_v62 = vadd.f32 %v885_v48, %v845_v41 }
 0x5db   :  { %v3226_v63 = vmax.f32 %v943_v33, 0.0 }
 0x5dc   :  { %965 = vadd.xlane.f32.xlu1 %v964_v29 }
 0x5dd   :  { %3962 = vst [vmem:[#allocation32_spill] sm:$0xff] %v3226_v63  ;;  %v967_v32 = vsel %vm286_vm1, %v3226_v63, 0.0  ;;  %v1000_v46 = vsel %vm286_vm1, %v3226_v63, -inf }
 0x5de   :  { %968 = vadd.xlane.f32.xlu0 %v967_v32  ;;  %v941_v32 = vadd.f32 %v933_v18, %v893_v62 }
 0x5e0   :  { %998 = vmax.xlane.f32.xlu1 %v997_v2 }
 0x5e2   :  { %1001 = vmax.xlane.f32.xlu0 %v1000_v46  ;;  %v3256_v46 = vmax.f32 %v941_v32, 0.0 }
 0x5e4   :  { %3964 = vst [vmem:[#allocation34_spill] sm:$0xff] %v3256_v46  ;;  %v994_v59 = vsel %vm286_vm1, %v3256_v46, -inf }
 0x5f0   :  { %v754_v58 = vpop.permute.xlu1 %753 }
 0x5f1   :  { %v770_v44 = vsel %vm439_vm6, 0.0, %v754_v58  ;;  %v961_v58 = vsel %vm286_vm1, %v3256_v46, 0.0 }
 0x5f2   :  { %v850_v22 = vmul.f32 %v3115_v26, %v770_v44 }
 0x5f4   :  { %v786_v31 = vpop.permute.xlu1 %785  ;;  %v898_v33 = vadd.f32 %v890_v39, %v850_v22  ;;  %v750_v47 = vpop.permute.xlu0 %749  ;;  %v888_v39 = vmul.f32 %v3162_v4, %v3062_v38 }
 0x5f5   :  { %v802_v37 = vsel %vm463_vm3, 0.0, %v786_v31  ;;  %v768_v41 = vsel %vm439_vm6, 0.0, %v750_v47 }
 0x5f6   :  { %v938_v29 = vmul.f32 %v3164_v11, %v802_v37  ;;  %v848_v22 = vmul.f32 %v3137_v51, %v768_v41 }
 0x5f8   :  { %v946_v35 = vadd.f32 %v938_v29, %v898_v33  ;;  %v896_v33 = vadd.f32 %v888_v39, %v848_v22 }
 0x5fa   :  { %v3250_v2 = vmax.f32 %v946_v35, 0.0  ;;  %v884_v35 = vmul.f32 %v3190_v36, %v3079_v45 }
 0x5fc   :  { %3963 = vst [vmem:[#allocation33_spill] sm:$0xff] %v3250_v2  ;;  %v1009_v34 = vsel %vm286_vm1, %v3250_v2, -inf  ;;  %v976_v30 = vsel %vm286_vm1, %v3250_v2, 0.0 }
 0x5fd   :  { %1010 = vmax.xlane.f32.xlu1 %v1009_v34  ;;  %977 = vadd.xlane.f32.xlu0 %v976_v30 }
 0x601   :  { %v3262_v44 = vpop.permute.xlu1 %904  ;;  %962 = vadd.xlane.f32.xlu0 %v961_v58  ;;  %v3264_v48 = vpop.permute.xlu0 %810 }
 0x605   :  { %v782_v62 = vpop.permute.xlu1 %781  ;;  %995 = vmax.xlane.f32.xlu0 %v994_v59  ;;  %v742_v31 = vpop.permute.xlu0 %741 }
 0x606   :  { %v800_v37 = vsel %vm463_vm3, 0.0, %v782_v62  ;;  %v764_v18 = vsel %vm439_vm6, 0.0, %v742_v31  ;;  %v883_v62 = vmul.f32 %v3186_v28, %v3070_v40 }
 0x607   :  { %v936_v29 = vmul.f32 %v3141_v56, %v800_v37  ;;  %v844_v32 = vmul.f32 %v3264_v48, %v764_v18 }
 0x609   :  { %v944_v34 = vadd.f32 %v936_v29, %v896_v33  ;;  %v740_v30 = vpop.permute.xlu1 %739  ;;  %v774_v38 = vpop.permute.xlu0 %773  ;;  %v892_v58 = vadd.f32 %v884_v35, %v844_v32 }
 0x60a   :  { %v763_v47 = vsel %vm439_vm6, 0.0, %v740_v30  ;;  %v796_v41 = vsel %vm463_vm3, 0.0, %v774_v38 }
 0x60b   :  { %v843_v59 = vmul.f32 %v3182_v25, %v763_v47  ;;  %v932_v22 = vmul.f32 %v3262_v44, %v796_v41  ;;  %v3285_v39 = vmax.f32 %v944_v34, 0.0 }
 0x60d   :  { %3965 = vst [vmem:[#allocation35_spill] sm:$0xff] %v3285_v39  ;;  %v940_v45 = vadd.f32 %v932_v22, %v892_v58  ;;  %v772_v31 = vpop.permute.xlu1 %771  ;;  %v970_v37 = vsel %vm286_vm1, %v3285_v39, 0.0  ;;  %v891_v33 = vadd.f32 %v883_v62, %v843_v59  ;;  %v1003_v35 = vsel %vm286_vm1, %v3285_v39, -inf }
 0x60e   :  { %v795_v18 = vsel %vm463_vm3, 0.0, %v772_v31  ;;  %971 = vadd.xlane.f32.xlu1 %v970_v37 }
 0x60f   :  { %v931_v29 = vmul.f32 %v3176_v19, %v795_v18  ;;  %v3296_v34 = vmax.f32 %v940_v45, 0.0 }
 0x611   :  { %v939_v32 = vadd.f32 %v931_v29, %v891_v33  ;;  %3966 = vst [vmem:[#allocation36_spill] sm:$0xff] %v3296_v34  ;;  %v958_v30 = vsel %vm286_vm1, %v3296_v34, 0.0  ;;  %v991_v47 = vsel %vm286_vm1, %v3296_v34, -inf }
 0x612   :  { %1004 = vmax.xlane.f32.xlu1 %v1003_v35 }
 0x613   :  { %v3298_v40 = vmax.f32 %v939_v32, 0.0 }
 0x615   :  { %3967 = vst [vmem:[#allocation37_spill] sm:$0xff] %v3298_v40  ;;  %v955_v38 = vsel %vm286_vm1, %v3298_v40, 0.0  ;;  %v988_v41 = vsel %vm286_vm1, %v3298_v40, -inf }
 0x616   :  { %959 = vadd.xlane.f32.xlu1 %v958_v30  ;;  %956 = vadd.xlane.f32.xlu0 %v955_v38  ;;  %v3968_v38 = vmov 0.0  }
 0x61a   :  { %992 = vmax.xlane.f32.xlu1 %v991_v47  ;;  %989 = vmax.xlane.f32.xlu0 %v988_v41 }
 0x661   :  { %v975_v58 = vpop.xlane.xlu1 %974  ;;  %v1008_v59 = vpop.xlane.xlu0 %1007 }
 0x662   :  { %v986_v37 = vmul.f32 0.0625, %v975_v58 }
 0x664   :  { %v1019_v32 = vsel %vm1012_vm10, %v986_v37, %v1008_v59 }
 0x665   :  { %v966_v62 = vpop.xlane.xlu1 %965 }
 0x666   :  { %v983_v46 = vmul.f32 0.0625, %v966_v62 }
 0x667   :  { %v969_v22 = vpop.xlane.xlu0 %968 }
 0x668   :  { %v984_v2 = vmul.f32 0.0625, %v969_v22 }
 0x669   :  { %v999_v31 = vpop.xlane.xlu1 %998 }
 0x66b   :  { %v1002_v45 = vpop.xlane.xlu0 %1001 }
 0x66c   :  { %v1017_v58 = vsel %vm1012_vm10, %v984_v2, %v1002_v45 }
 0x686   :  { %v978_v18 = vpop.xlane.xlu0 %977  ;;  %v1011_v29 = vpop.xlane.xlu1 %1010 }
 0x687   :  { %v987_v33 = vmul.f32 0.0625, %v978_v18 }
 0x689   :  { %v1020_v35 = vsel %vm1012_vm10, %v987_v33, %v1011_v29  ;;  %v1016_v29 = vsel %vm1012_vm10, %v983_v46, %v999_v31  ;;  %v3322_v46 = vld [vmem:[%s3931_s9] sm:$0x3] }
 0x68a   :  { %v1024_v30 = vpack.c.bf16 %v1020_v35, %v1019_v32  ;;  %v963_v47 = vpop.xlane.xlu0 %962 }
 0x68b   :  { %v982_v63 = vmul.f32 0.0625, %v963_v47 }
 0x68c   :  { %2299 = vmatpush3.bf16.msra.mxu1 %v1024_v30 }
 0x68d   :  { %2300 = vmatprep.subr.bf16.mxu1 %v3968_v38 }
 0x68e   :  { %v996_v61 = vpop.xlane.xlu0 %995 }
 0x68f   :  { %v1015_v59 = vsel %vm1012_vm10, %v982_v63, %v996_v61  ;;  %v1379_v61 = vld [vmem:[#allocation2 + $0x10] sm:$0xff]  ;;  %v1380_v63 = vld [vmem:[#allocation2 + $0x18] sm:$0xff] }
 0x690   :  { %v1022_v22 = vpack.c.bf16 %v1016_v29, %v1015_v59 }
 0x697   :  { %v972_v41 = vpop.xlane.xlu1 %971 }
 0x698   :  { %v985_v39 = vmul.f32 0.0625, %v972_v41 }
 0x69b   :  { %v1005_v0 = vpop.xlane.xlu1 %1004 }
 0x69c   :  { %v1018_v18 = vsel %vm1012_vm10, %v985_v39, %v1005_v0 }
 0x69d   :  { %v1023_v34 = vpack.c.bf16 %v1018_v18, %v1017_v58 }
 0x69f   :  { %v960_v37 = vpop.xlane.xlu1 %959  ;;  %2301 = vmatpush3.bf16.msra.mxu1 %v1023_v34  ;;  %v957_v33 = vpop.xlane.xlu0 %956  ;;  %v1381_v34 = vpack.c.bf16 %v1380_v63, %v1379_v61  ;;  %v2472_v61 = vld [vmem:[#allocation4 + $0x8] sm:$0xff]   ;;  %v2473_v63 = vld [vmem:[#allocation4 + $0x10] sm:$0xff]  }
 0x6a0   :  { %2302 = vmatprep.subr.bf16.mxu1 %v3968_v38  ;;  %v981_v32 = vmul.f32 0.0625, %v960_v37  ;;  %v980_v35 = vmul.f32 0.0625, %v957_v33  ;;  %2263 = vmatmul.mubr.msk.bf16.gmra.mxu0 %vm286_vm1, %v2472_v61 }
 0x6a1   :  { %2266 = vmatprep.mubr.msk.bf16.mxu0 %vm2792_vm0, %v3968_v38 }
 0x6a3   :  { %v993_v30 = vpop.xlane.xlu1 %992  ;;  %2303 = vmatpush3.bf16.msra.mxu1 %v1022_v22  ;;  %v990_v2 = vpop.xlane.xlu0 %989 }
 0x6a4   :  { %v1014_v45 = vsel %vm1012_vm10, %v981_v32, %v993_v30  ;;  %v1013_v0 = vsel %vm1012_vm10, %v980_v35, %v990_v2  ;;  %2304 = vmatprep.subr.bf16.mxu1 %v3968_v38 }
 0x6a5   :  { %v1021_v39 = vpack.c.bf16 %v1014_v45, %v1013_v0  ;;  %v241_v0 = vld [vmem:[#allocation15] sm:$0xf] }
 0x6a7   :  { %2305 = vmatpush3.bf16.msra.mxu1 %v1021_v39  ;;  %v2474_v39 = vld [vmem:[#allocation4 + $0x18] sm:$0xff]  }
 0x6a8   :  { %2320 = vmatprep.subr.bf16.mxu1 %v3968_v38  ;;  %2267 = vmatmul.mubr.msk.bf16.gmra.mxu0 %vm286_vm1, %v2473_v63 }
 0x6a9   :  { %2270 = vmatprep.mubr.msk.bf16.mxu0 %vm2792_vm0, %v3968_v38 }
 0x6aa   :  { %2307 = vmatmul.mubr.msk.bf16.vlgmr.msra.gmra.mxu1 %vm1030_vm11, %v3322_v46 }
 0x6ab   :  { %2321 = vmatpush3.bf16.msra.mxu1 %v1381_v34  ;;  %2322 = vmatprep.mubr.msk.bf16.mxu1 %vm2792_vm0, %v3968_v38  ;;  %v2475_v34 = vld [vmem:[#allocation4 + $0x20] sm:$0xff]  }
 0x6b0   :  { %2271 = vmatmul.mubr.msk.bf16.gmra.mxu0 %vm286_vm1, %v2474_v39 }
 0x6b1   :  { %2274 = vmatprep.mubr.msk.bf16.mxu0 %vm2792_vm0, %v3968_v38 }
 0x6b2   :  { %2323 = vmatmul.mubr.msk.bf16.vlgmr.msra.gmra.mxu1 %vm286_vm1, %v2940_v5 }
 0x6b3   :  { %2326 = vmatprep.mubr.msk.bf16.mxu1 %vm2792_vm0, %v3968_v38 }
 0x6b8   :  { %2275 = vmatmul.mubr.msk.bf16.gmra.mxu0 %vm286_vm1, %v2475_v34 }
 0x6ba   :  { %2327 = vmatmul.mubr.msk.bf16.gmra.mxu1 %vm286_vm1, %v2472_v61 }
 0x6bb   :  { %2330 = vmatprep.mubr.msk.bf16.mxu1 %vm2792_vm0, %v3968_v38 }
 0x6c2   :  { %2331 = vmatmul.mubr.msk.bf16.gmra.mxu1 %vm286_vm1, %v2473_v63 }
 0x6c3   :  { %2334 = vmatprep.mubr.msk.bf16.mxu1 %vm2792_vm0, %v3968_v38 }
 0x6ca   :  { %2335 = vmatmul.mubr.msk.bf16.gmra.mxu1 %vm286_vm1, %v2474_v39 }
 0x6cb   :  { %2338 = vmatprep.mubr.msk.bf16.mxu1 %vm2792_vm0, %v3968_v38 }
 0x6d2   :  { %2339 = vmatmul.mubr.msk.bf16.gmra.mxu1 %vm286_vm1, %v2475_v34 }
 0x76a   :  { %v1068_v62 = vpop.f32.mrf.mxu1 }
 0x76c   :  { %v2308_v31 = vpop.f32.mrf.mxu1 }
 0x76d   :  { %v2476_v31 = vld [vmem:[#allocation16] sm:$0xff]  }
 0x76e   :  { %v1071_v47 = vpop.f32.mrf.mxu1  ;;  %2312 = vmatprep.mubr.msk.bf16.mxu0 %vm1136_vm12, %v2476_v31  ;;  %2376 = vmatprep.mubr.msk.bf16.mxu1 %vm1136_vm12, %v2476_v31 }
 0x770   :  { %v2309_v41 = vpop.f32.mrf.mxu1 }
 0x772   :  { %v1416_v58 = vpop.f32.mrf.mxu1 }
 0x773   :  { %v1455_v59 = vadd.f32 %v1416_v58, %v2946_v8 }
 0x774   :  { %v2324_v18 = vpop.f32.mrf.mxu1 }
 0x775   :  { %v3335_v22 = vmax.f32 %v1455_v59, 0.0 }
 0x776   :  { %v1419_v37 = vpop.f32.mrf.mxu1 }
 0x777   :  { %v1456_v33 = vadd.f32 %v1419_v37, %v2949_v12 }
 0x778   :  { %v2325_v29 = vpop.f32.mrf.mxu1 }
 0x779   :  { %v3337_v32 = vmax.f32 %v1456_v33, 0.0 }
 0x77b   :  { %v2445_v5 = vpack.i.bf16 %v3337_v32, %v3335_v22 }
 0x77d   :  { %2446 = vrot.lane.b32.xlu0 %v2445_v5, %s2794_s10 }
 0x7ef   :  { %v2447_v35 = vpop.permute.xlu0 %2446 }
 0x7f0   :  { %v2449_v30 = vunpack.i.h.bf16 %v2447_v35  ;;  %v2448_v2 = vunpack.i.l.bf16 %v2447_v35 }
 0x7f2   :  { %v1469_v45 = vsel %vm440_vm2, %v2448_v2, %v3335_v22  ;;  %v1472_v8 = vsel %vm440_vm2, %v2449_v30, %v3337_v32  ;;  %v3380_v2 = vld [vmem:[#allocation16 + $0x8] sm:$0xff]  }
 0x7f3   :  { %v2450_v12 = vpack.i.bf16 %v1472_v8, %v1469_v45  ;;  %v3382_v45 = vld [vmem:[#allocation16 + $0x10] sm:$0xff]   ;;  %v3395_v8 = vpop.f32.mrf.mxu0 }
 0x7f4   :  { %3969 = vst [vmem:[#allocation38_spill] sm:$0xff] %v3395_v8 }
 0x7f5   :  { %2451 = vrot.lane.b32.xlu1 %v2450_v12, %s2794_s10  ;;  %v2264_v12 = vpop.f32.mrf.mxu0 }
 0x7f9   :  { %1027 = vperm.xlu1 %2455, %v241_v0   ;;  %v3397_v0 = vpop.f32.mrf.mxu0 }
 0x7fa   :  { %3970 = vst [vmem:[#allocation39_spill] sm:$0xff] %v3397_v0 }
 0x7fb   :  { %v2265_v61 = vpop.f32.mrf.mxu0 }
 0x7fd   :  { %v3399_v63 = vpop.f32.mrf.mxu0 }
 0x7fe   :  { %3971 = vst [vmem:[#allocation40_spill] sm:$0xff] %v3399_v63 }
 0x7ff   :  { %v2268_v39 = vpop.f32.mrf.mxu0 }
 0x801   :  { %v3401_v34 = vpop.f32.mrf.mxu0 }
 0x802   :  { %3972 = vst [vmem:[#allocation41_spill] sm:$0xff] %v3401_v34  ;;  %v3980_v34 = vld [vmem:[#allocation29_spill] sm:$0xff] }
 0x803   :  { %v2269_v31 = vpop.f32.mrf.mxu0 }
 0x867   :  { %v2452_v47 = vpop.permute.xlu1 %2451 }
 0x868   :  { %v2454_v41 = vunpack.i.h.bf16 %v2452_v47  ;;  %v2453_v58 = vunpack.i.l.bf16 %v2452_v47  ;;  %v3403_v47 = vpop.f32.mrf.mxu0 }
 0x869   :  { %3973 = vst [vmem:[#allocation42_spill] sm:$0xff] %v3403_v47 }
 0x86a   :  { %v1478_v18 = vsel %vm440_vm2, %v2454_v41, %v3337_v32  ;;  %v1477_v59 = vsel %vm440_vm2, %v2453_v58, %v3335_v22  ;;  %v2272_v41 = vpop.f32.mrf.mxu0 }
 0x86b   :  { %v2461_v37 = vpack.i.bf16 %v1478_v18, %v1477_v59 }
 0x86c   :  { %v3405_v58 = vpop.f32.mrf.mxu0 }
 0x86d   :  { %2462 = vrot.lane.b32.xlu1 %v2461_v37, %s2795_s12  ;;  %2457 = vrot.lane.b32.xlu0 %v2461_v37, %s2796_s20  ;;  %3974 = vst [vmem:[#allocation43_spill] sm:$0xff] %v3405_v58 }
 0x86e   :  { %v2273_v18 = vpop.f32.mrf.mxu0 }
 0x86f   :  { %v1498_v18 = vpack.c.bf16 %v3337_v32, %v3335_v22 }
 0x870   :  { %v3407_v59 = vpop.f32.mrf.mxu0 }
 0x871   :  { %3975 = vst [vmem:[#allocation44_spill] sm:$0xff] %v3407_v59 }
 0x872   :  { %v2276_v37 = vpop.f32.mrf.mxu0 }
 0x874   :  { %v3375_v33 = vpop.permute.xlu1 %1027 }
 0x875   :  { %v1069_v29 = vadd.f32 %v1068_v62, %v3375_v33  ;;  %v3389_v62 = vld [vmem:[#allocation16 + $0x18] sm:$0xff]  }
 0x877   :  { %v1074_v5 = vmax.f32 %v1069_v29, 0.0  ;;  %v3409_v29 = vpop.f32.mrf.mxu0 }
 0x878   :  { %3976 = vst [vmem:[#allocation45_spill] sm:$0xff] %v3409_v29 }
 0x879   :  { %v1075_v35 = vpack.c.bf16 %v1074_v5, %v1074_v5  ;;  %v2277_v5 = vpop.f32.mrf.mxu0 }
 0x87b   :  { %2384 = vmatprep.subr.msk.bf16.mxu0 %vm1149_vm13, %v1075_v35  ;;  %v1151_v30 = vsel %vm1149_vm13, %v1075_v35, 0 }
 0x87c   :  { %2311 = vmatpush3.bf16.msra.mxu0 %v1151_v30 }
 0x87d   :  { %2342 = vmatprep.subr.bf16.mxu0 %v3968_v38 }
 0x87f   :  { %2313 = vmatmul.mubr.msk.bf16.vlgmr.msra.gmra.mxu0 %vm1136_vm12, %v3380_v2 }
 0x880   :  { %2316 = vmatprep.mubr.msk.bf16.mxu0 %vm1136_vm12, %v3382_v45 }
 0x887   :  { %2317 = vmatmul.mubr.msk.bf16.gmra.mxu0 %vm1136_vm12, %v3389_v62 }
 0x888   :  { %2348 = vmatprep.mubr.msk.bf16.mxu0 %vm2792_vm0, %v3968_v38 }
 0x8df   :  { %v2458_v35 = vpop.permute.xlu0 %2457  ;;  %v2463_v39 = vpop.permute.xlu1 %2462 }
 0x8e0   :  { %v2460_v30 = vunpack.i.h.bf16 %v2458_v35  ;;  %v2459_v12 = vunpack.i.l.bf16 %v2458_v35  ;;  %v2465_v31 = vunpack.i.h.bf16 %v2463_v39  ;;  %v2464_v41 = vunpack.i.l.bf16 %v2463_v39 }
 0x8e2   :  { %v2181_v61 = vpack.c.bf16 %v2460_v30, %v2459_v12  ;;  %v2186_v37 = vpack.c.bf16 %v2465_v31, %v2464_v41 }
 0x8e4   :  { %2343 = vmatpush3.bf16.msk.msra.mxu0 %vm2147_vm5, %v2181_v61 }
 0x8e5   :  { %2344 = vmatprep.subr.bf16.mxu0 %v3968_v38 }
 0x8e8   :  { %2345 = vmatpush3.bf16.msra.mxu0 %v1498_v18 }
 0x8e9   :  { %2346 = vmatprep.subr.bf16.mxu0 %v3968_v38 }
 0x8ec   :  { %2347 = vmatpush3.bf16.msk.msra.mxu0 %vm2152_vm8, %v2186_v37 }
 0x8ef   :  { %2349 = vmatmul.mubr.msk.bf16.vlgmr.msra.gmra.mxu0 %vm490_vm9, %v2992_v54 }
 0x8f0   :  { %2354 = vmatprep.mubr.msk.bf16.mxu0 %vm286_vm1, %v3001_v55 }
 0x93f   :  { %v3429_v43 = vpop.f32.mrf.mxu0 }
 0x941   :  { %v3431_v5 = vpop.f32.mrf.mxu0 }
 0x943   :  { %v3433_v22 = vpop.f32.mrf.mxu0 }
 0x945   :  { %v3435_v32 = vpop.f32.mrf.mxu0 }
 0x947   :  { %v3437_v35 = vpop.f32.mrf.mxu0 }
 0x949   :  { %v3439_v30 = vpop.f32.mrf.mxu0 }
 0x94b   :  { %v3441_v52 = vpop.f32.mrf.mxu0 }
 0x94d   :  { %v3443_v12 = vpop.f32.mrf.mxu0 }
 0x9af   :  { %v1534_v54 = vpop.f32.mrf.mxu0 }
 0x9b0   :  { %v1535_v55 = vadd.f32 %v1534_v54, %v3005_v57 }
 0x9b1   :  { %v2350_v61 = vpop.f32.mrf.mxu0 }
 0x9b2   :  { %v1541_v18 = vmax.f32 %v1535_v55, 0.0 }
 0x9b3   :  { %v1537_v39 = vpop.f32.mrf.mxu0 }
 0x9b4   :  { %v1538_v31 = vadd.f32 %v1537_v39, %v3008_v60 }
 0x9b5   :  { %v2351_v41 = vpop.f32.mrf.mxu0 }
 0x9b6   :  { %v1542_v37 = vmax.f32 %v1538_v31, 0.0 }
 0x9b8   :  { %v1543_v29 = vpack.c.bf16 %v1542_v37, %v1541_v18 }
 0x9ba   :  { %2352 = vmatprep.subr.bf16.mxu0 %v1543_v29 }
 0x9bb   :  { %2353 = vmatpush3.bf16.msra.mxu0 %v1543_v29 }
 0x9bc   :  { %2362 = vmatprep.subr.bf16.mxu0 %v3968_v38 }
 0x9be   :  { %2355 = vmatmul.mubr.msk.bf16.vlgmr.msra.gmra.mxu0 %vm286_vm1, %v3011_v6 }
 0x9bf   :  { %2358 = vmatprep.mubr.msk.bf16.mxu0 %vm286_vm1, %v3013_v7 }
 0x9c6   :  { %2359 = vmatmul.mubr.msk.bf16.gmra.mxu0 %vm286_vm1, %v3020_v9 }
 0x9c7   :  { %2370 = vmatprep.mubr.msk.bf16.mxu0 %vm2792_vm0, %v3968_v38 }
 0xa7e   :  { %v2356_v57 = vpop.f32.mrf.mxu0 }
 0xa7f   :  { %v1587_v18 = vadd.f32 %v2356_v57, %v3038_v24  ;;  %v3979_v57 = vld [vmem:[#allocation27_spill] sm:$0xff] }
 0xa80   :  { %v1578_v60 = vpop.f32.mrf.mxu0 }
 0xa82   :  { %v2357_v54 = vpop.f32.mrf.mxu0 }
 0xa84   :  { %v1581_v61 = vpop.f32.mrf.mxu0 }
 0xa86   :  { %v2360_v55 = vpop.f32.mrf.mxu0 }
 0xa87   :  { %v1603_v29 = vadd.f32 %v2360_v55, %v3026_v10 }
 0xa88   :  { %v1594_v39 = vpop.f32.mrf.mxu0 }
 0xa89   :  { %v3457_v31 = vmax.f32 %v1603_v29, 0.0  ;;  %v1595_v6 = vadd.f32 %v1594_v39, %v3030_v16  ;;  %v3473_v16 = vmax.f32 %v1587_v18, 0.0  ;;  %v3978_v29 = vld [vmem:[#allocation25_spill] sm:$0xff] }
 0xa8a   :  { %v2361_v41 = vpop.f32.mrf.mxu0  ;;  %v1590_v39 = vadd.f32 %v2357_v54, %v3978_v29 }
 0xa8b   :  { %v1606_v7 = vadd.f32 %v2361_v41, %v3028_v14  ;;  %1635 = vrot.lane.b32.xlu0 %v3457_v31, %s2794_s10  ;;  %v3464_v37 = vmax.f32 %v1595_v6, 0.0  ;;  %v3977_v14 = vld [vmem:[#allocation26_spill] sm:$0xff]  ;;  %v1582_v6 = vadd.f32 %v1581_v61, %v3979_v57 }
 0xa8c   :  { %v1597_v9 = vpop.f32.mrf.mxu0  ;;  %v1579_v55 = vadd.f32 %v1578_v60, %v3977_v14  ;;  %v3485_v24 = vmax.f32 %v1590_v39, 0.0 }
 0xa8d   :  { %v3466_v58 = vmax.f32 %v1606_v7, 0.0  ;;  %v1598_v10 = vadd.f32 %v1597_v9, %v3033_v20  ;;  %v3492_v60 = vmax.f32 %v1582_v6, 0.0 }
 0xa8e   :  { %v3483_v20 = vmax.f32 %v1579_v55, 0.0 }
 0xa8f   :  { %1638 = vrot.lane.b32.xlu1 %v3466_v58, %s2794_s10  ;;  %1629 = vrot.lane.b32.xlu0 %v3464_v37, %s2794_s10  ;;  %v3477_v41 = vmax.f32 %v1598_v10, 0.0 }
 0xa93   :  { %1632 = vrot.lane.b32.xlu1 %v3477_v41, %s2794_s10  ;;  %1623 = vrot.lane.b32.xlu0 %v3473_v16, %s2794_s10 }
 0xa97   :  { %1626 = vrot.lane.b32.xlu1 %v3485_v24, %s2794_s10  ;;  %1617 = vrot.lane.b32.xlu0 %v3483_v20, %s2794_s10 }
 0xa9b   :  { %1620 = vrot.lane.b32.xlu1 %v3492_v60, %s2794_s10 }
 0xafd   :  { %v1636_v54 = vpop.permute.xlu0 %1635 }
 0xafe   :  { %v1637_v7 = vsel %vm440_vm2, %v1636_v54, %v3457_v31 }
 0xaff   :  { %1653 = vrot.lane.b32.xlu0 %v1637_v7, %s2794_s10 }
 0xb01   :  { %v1639_v9 = vpop.permute.xlu1 %1638  ;;  %v1630_v18 = vpop.permute.xlu0 %1629 }
 0xb02   :  { %v1640_v61 = vsel %vm440_vm2, %v1639_v9, %v3466_v58  ;;  %v1631_v10 = vsel %vm440_vm2, %v1630_v18, %v3464_v37 }
 0xb03   :  { %1655 = vrot.lane.b32.xlu1 %v1640_v61, %s2794_s10  ;;  %1649 = vrot.lane.b32.xlu0 %v1631_v10, %s2794_s10 }
 0xb05   :  { %v1633_v14 = vpop.permute.xlu1 %1632  ;;  %v1624_v55 = vpop.permute.xlu0 %1623 }
 0xb06   :  { %v1634_v29 = vsel %vm440_vm2, %v1633_v14, %v3477_v41  ;;  %v1625_v39 = vsel %vm440_vm2, %v1624_v55, %v3473_v16 }
 0xb07   :  { %1651 = vrot.lane.b32.xlu1 %v1634_v29, %s2794_s10  ;;  %1645 = vrot.lane.b32.xlu0 %v1625_v39, %s2794_s10 }
 0xb09   :  { %v1627_v57 = vpop.permute.xlu1 %1626  ;;  %v1618_v6 = vpop.permute.xlu0 %1617 }
 0xb0a   :  { %v1628_v54 = vsel %vm440_vm2, %v1627_v57, %v3485_v24  ;;  %v1619_v7 = vsel %vm440_vm2, %v1618_v6, %v3483_v20 }
 0xb0b   :  { %1647 = vrot.lane.b32.xlu1 %v1628_v54, %s2794_s10  ;;  %1641 = vrot.lane.b32.xlu0 %v1619_v7, %s2794_s10 }
 0xb0d   :  { %v1621_v9 = vpop.permute.xlu1 %1620 }
 0xb0e   :  { %v1622_v18 = vsel %vm440_vm2, %v1621_v9, %v3492_v60 }
 0xb0f   :  { %1643 = vrot.lane.b32.xlu1 %v1622_v18, %s2794_s10 }
 0xb71   :  { %v1654_v61 = vpop.permute.xlu0 %1653 }
 0xb72   :  { %v1663_v54 = vsel %vm440_vm2, %v1654_v61, %v3457_v31 }
 0xb75   :  { %v1656_v10 = vpop.permute.xlu1 %1655  ;;  %v1650_v14 = vpop.permute.xlu0 %1649 }
 0xb76   :  { %v1664_v7 = vsel %vm440_vm2, %v1656_v10, %v3466_v58  ;;  %v1661_v9 = vsel %vm440_vm2, %v1650_v14, %v3464_v37 }
 0xb79   :  { %v1652_v55 = vpop.permute.xlu1 %1651  ;;  %v1646_v29 = vpop.permute.xlu0 %1645 }
 0xb7a   :  { %v1659_v39 = vsel %vm440_vm2, %v1646_v29, %v3473_v16  ;;  %v1662_v18 = vsel %vm440_vm2, %v1652_v55, %v3477_v41 }
 0xb7b   :  { %1677 = vrot.lane.b32.xlu0 %v1659_v39, %s2795_s12 }
 0xb7d   :  { %v1648_v57 = vpop.permute.xlu1 %1647  ;;  %v1642_v61 = vpop.permute.xlu0 %1641 }
 0xb7e   :  { %v1660_v6 = vsel %vm440_vm2, %v1648_v57, %v3485_v24  ;;  %v1657_v10 = vsel %vm440_vm2, %v1642_v61, %v3483_v20  ;;  %v1751_v61 = vmul.f32 %v3457_v31, %v3159_v3 }
 0xb7f   :  { %1679 = vrot.lane.b32.xlu1 %v1660_v6, %s2795_s12  ;;  %1709 = vrot.lane.b32.xlu0 %v1659_v39, %s2796_s20 }
 0xb81   :  { %v1644_v29 = vpop.permute.xlu1 %1643 }
 0xb82   :  { %v1658_v14 = vsel %vm440_vm2, %v1644_v29, %v3492_v60 }
 0xb83   :  { %1711 = vrot.lane.b32.xlu1 %v1660_v6, %s2796_s20  ;;  %1685 = vrot.lane.b32.xlu0 %v1663_v54, %s2795_s12 }
 0xb87   :  { %1687 = vrot.lane.b32.xlu1 %v1664_v7, %s2795_s12  ;;  %1717 = vrot.lane.b32.xlu0 %v1663_v54, %s2796_s20 }
 0xb8b   :  { %1719 = vrot.lane.b32.xlu1 %v1664_v7, %s2796_s20  ;;  %1681 = vrot.lane.b32.xlu0 %v1661_v9, %s2795_s12 }
 0xb8f   :  { %1683 = vrot.lane.b32.xlu1 %v1662_v18, %s2795_s12  ;;  %1713 = vrot.lane.b32.xlu0 %v1661_v9, %s2796_s20 }
 0xb93   :  { %1715 = vrot.lane.b32.xlu1 %v1662_v18, %s2796_s20  ;;  %1673 = vrot.lane.b32.xlu0 %v1657_v10, %s2795_s12 }
 0xb97   :  { %1675 = vrot.lane.b32.xlu1 %v1658_v14, %s2795_s12  ;;  %1705 = vrot.lane.b32.xlu0 %v1657_v10, %s2796_s20 }
 0xb9b   :  { %1707 = vrot.lane.b32.xlu1 %v1658_v14, %s2796_s20 }
 0xbed   :  { %v1678_v55 = vpop.permute.xlu0 %1677 }
 0xbf1   :  { %v1680_v39 = vpop.permute.xlu1 %1679  ;;  %v1710_v57 = vpop.permute.xlu0 %1709 }
 0xbf2   :  { %v1700_v18 = vsel %vm439_vm6, 0.0, %v1680_v39 }
 0xbf3   :  { %v1740_v47 = vmul.f32 %v1700_v18, %v3980_v34 }
 0xbf5   :  { %v1712_v6 = vpop.permute.xlu1 %1711  ;;  %v1686_v54 = vpop.permute.xlu0 %1685 }
 0xbf6   :  { %v1703_v7 = vsel %vm439_vm6, 0.0, %v1686_v54  ;;  %v1732_v14 = vsel %vm463_vm3, 0.0, %v1712_v6 }
 0xbf7   :  { %v1743_v9 = vmul.f32 %v1703_v7, %v3180_v23  ;;  %v3981_v23 = vld [vmem:[#allocation28_spill] sm:$0xff]  ;;  %v1764_v39 = vmul.f32 %v1732_v14, %v3178_v21  ;;  %v1749_v21 = vmul.f32 %v3464_v37, %v3139_v53  ;;  %v1752_v53 = vmul.f32 %v3466_v58, %v3133_v49 }
 0xbf8   :  { %v1748_v7 = vmul.f32 %v3485_v24, %v3981_v23 }
 0xbf9   :  { %v1688_v29 = vpop.permute.xlu1 %1687  ;;  %v1718_v10 = vpop.permute.xlu0 %1717  ;;  %v1759_v0 = vadd.f32 %v1751_v61, %v1743_v9 }
 0xbfa   :  { %v1735_v59 = vsel %vm463_vm3, 0.0, %v1718_v10  ;;  %v1756_v6 = vadd.f32 %v1748_v7, %v1740_v47  ;;  %v1704_v10 = vsel %vm439_vm6, 0.0, %v1688_v29 }
 0xbfb   :  { %v1767_v54 = vmul.f32 %v1735_v59, %v3135_v50  ;;  %v1744_v47 = vmul.f32 %v1704_v10, %v3115_v26  ;;  %v1731_v26 = vsel %vm463_vm3, 0.0, %v1710_v57  ;;  %v1747_v57 = vmul.f32 %v3473_v16, %v3170_v1 }
 0xbfc   :  { %v1772_v50 = vadd.f32 %v1764_v39, %v1756_v6  ;;  %v1763_v39 = vmul.f32 %v1731_v26, %v3172_v17 }
 0xbfd   :  { %v1775_v63 = vadd.f32 %v1767_v54, %v1759_v0  ;;  %v1720_v3 = vpop.permute.xlu1 %1719  ;;  %v1682_v31 = vpop.permute.xlu0 %1681  ;;  %v1760_v7 = vadd.f32 %v1752_v53, %v1744_v47 }
 0xbfe   :  { %v1701_v40 = vsel %vm439_vm6, 0.0, %v1682_v31  ;;  %v1736_v59 = vsel %vm463_vm3, 0.0, %v1720_v3  ;;  %v3594_v29 = vmax.f32 %v1772_v50, 0.0  ;;  %v1750_v31 = vmul.f32 %v3477_v41, %v3162_v4 }
 0xbff   :  { %v3572_v8 = vmax.f32 %v1775_v63, 0.0  ;;  %v1741_v34 = vmul.f32 %v1701_v40, %v3184_v27  ;;  %v1699_v27 = vsel %vm439_vm6, 0.0, %v1678_v55  ;;  %v1768_v37 = vmul.f32 %v1736_v59, %v3164_v11 }
 0xc00   :  { %v1794_v10 = vsel %vm286_vm1, %v3594_v29, 0.0 }
 0xc01   :  { %v1684_v0 = vpop.permute.xlu1 %1683  ;;  %v1714_v24 = vpop.permute.xlu0 %1713  ;;  %v1803_v9 = vsel %vm286_vm1, %v3572_v8, 0.0  ;;  %v1757_v40 = vadd.f32 %v1749_v21, %v1741_v34  ;;  %v1835_v55 = vsel %vm286_vm1, %v3572_v8, -inf  ;;  %v1776_v3 = vadd.f32 %v1768_v37, %v1760_v7 }
 0xc02   :  { %v1733_v63 = vsel %vm463_vm3, 0.0, %v1714_v24  ;;  %1804 = vadd.xlane.f32.xlu0 %v1803_v9  ;;  %v1702_v61 = vsel %vm439_vm6, 0.0, %v1684_v0  ;;  %v1826_v21 = vsel %vm286_vm1, %v3594_v29, -inf }
 0xc03   :  { %v1765_v18 = vmul.f32 %v1733_v63, %v3168_v15  ;;  %v1739_v15 = vmul.f32 %v1699_v27, %v3166_v13  ;;  %v1742_v11 = vmul.f32 %v1702_v61, %v3137_v51  ;;  %v3614_v17 = vmax.f32 %v1776_v3, 0.0  ;;  %v254_v3 = vld [vmem:[#allocation18 + $0x20] sm:$0xff] }
 0xc05   :  { %v1773_v14 = vadd.f32 %v1765_v18, %v1757_v40  ;;  %v1716_v54 = vpop.permute.xlu1 %1715  ;;  %v1674_v23 = vpop.permute.xlu0 %1673  ;;  %v1755_v34 = vadd.f32 %v1747_v57, %v1739_v15  ;;  %v1758_v50 = vadd.f32 %v1750_v31, %v1742_v11  ;;  %v1745_v40 = vmul.f32 %v3483_v20, %v3186_v28  ;;  %v252_v11 = vld [vmem:[#allocation18 + $0x10] sm:$0xff]  ;;  %v251_v57 = vld [vmem:[#allocation18 + $0x8] sm:$0xff] }
 0xc06   :  { %v1734_v49 = vsel %vm463_vm3, 0.0, %v1716_v54  ;;  %1836 = vmax.xlane.f32.xlu0 %v1835_v55  ;;  %v1697_v4 = vsel %vm439_vm6, 0.0, %v1674_v23  ;;  %v1746_v18 = vmul.f32 %v3492_v60, %v3190_v36  ;;  %v1838_v53 = vsel %vm286_vm1, %v3614_v17, -inf  ;;  %v255_v31 = vld [vmem:[#allocation18 + $0x28] sm:$0xff] }
 0xc07   :  { %v3602_v58 = vmax.f32 %v1773_v14, 0.0  ;;  %v1766_v13 = vmul.f32 %v1734_v49, %v3141_v56  ;;  %v1771_v16 = vadd.f32 %v1763_v39, %v1755_v34  ;;  %v1737_v47 = vmul.f32 %v1697_v4, %v3182_v25  ;;  %v250_v49 = vld [vmem:[#allocation18] sm:$0xff]  ;;  %v253_v39 = vld [vmem:[#allocation18 + $0x18] sm:$0xff] }
 0xc08   :  { %v1806_v25 = vsel %vm286_vm1, %v3614_v17, 0.0 }
 0xc09   :  { %v1676_v6 = vpop.permute.xlu1 %1675  ;;  %v1797_v51 = vsel %vm286_vm1, %v3602_v58, 0.0  ;;  %v1706_v1 = vpop.permute.xlu0 %1705  ;;  %v1774_v41 = vadd.f32 %v1766_v13, %v1758_v50  ;;  %v1829_v0 = vsel %vm286_vm1, %v3602_v58, -inf  ;;  %v3630_v27 = vmax.f32 %v1771_v16, 0.0  ;;  %v256_v13 = vld [vmem:[#allocation18 + $0x30] sm:$0xff] }
 0xc0a   :  { %1795 = vadd.xlane.f32.xlu0 %v1794_v10  ;;  %1798 = vadd.xlane.f32.xlu1 %v1797_v51  ;;  %v1698_v56 = vsel %vm439_vm6, 0.0, %v1676_v6  ;;  %v1729_v24 = vsel %vm463_vm3, 0.0, %v1706_v1  ;;  %v257_v6 = vld [vmem:[#allocation18 + $0x38] sm:$0xff] }
 0xc0b   :  { %v1738_v63 = vmul.f32 %v1698_v56, %v3264_v48  ;;  %v3638_v37 = vmax.f32 %v1774_v41, 0.0  ;;  %v1761_v42 = vmul.f32 %v1729_v24, %v3176_v19  ;;  %v1753_v48 = vadd.f32 %v1745_v40, %v1737_v47 }
 0xc0c   :  { %v1791_v60 = vsel %vm286_vm1, %v3630_v27, 0.0  ;;  %v1823_v54 = vsel %vm286_vm1, %v3630_v27, -inf }
 0xc0d   :  { %v1708_v59 = vpop.permute.xlu1 %1707  ;;  %v1754_v26 = vadd.f32 %v1746_v18, %v1738_v63  ;;  %v1769_v28 = vadd.f32 %v1761_v42, %v1753_v48  ;;  %v1800_v36 = vsel %vm286_vm1, %v3638_v37, 0.0  ;;  %v1832_v14 = vsel %vm286_vm1, %v3638_v37, -inf }
 0xc0e   :  { %v1730_v9 = vsel %vm463_vm3, 0.0, %v1708_v59  ;;  %1827 = vmax.xlane.f32.xlu0 %v1826_v21  ;;  %1830 = vmax.xlane.f32.xlu1 %v1829_v0 }
 0xc0f   :  { %v1762_v61 = vmul.f32 %v1730_v9, %v3262_v44  ;;  %v3648_v19 = vmax.f32 %v1769_v28, 0.0 }
 0xc11   :  { %v1770_v20 = vadd.f32 %v1762_v61, %v1754_v26  ;;  %v1785_v55 = vsel %vm286_vm1, %v3648_v19, 0.0  ;;  %v1817_v7 = vsel %vm286_vm1, %v3648_v19, -inf }
 0xc12   :  { %1839 = vmax.xlane.f32.xlu0 %v1838_v53  ;;  %1807 = vadd.xlane.f32.xlu1 %v1806_v25 }
 0xc13   :  { %v3650_v44 = vmax.f32 %v1770_v20, 0.0 }
 0xc15   :  { %v1788_v23 = vsel %vm286_vm1, %v3650_v44, 0.0  ;;  %v1820_v15 = vsel %vm286_vm1, %v3650_v44, -inf }
 0xc16   :  { %1801 = vadd.xlane.f32.xlu0 %v1800_v36  ;;  %1792 = vadd.xlane.f32.xlu1 %v1791_v60 }
 0xc1a   :  { %1833 = vmax.xlane.f32.xlu0 %v1832_v14  ;;  %1824 = vmax.xlane.f32.xlu1 %v1823_v54 }
 0xc1e   :  { %1789 = vadd.xlane.f32.xlu0 %v1788_v23  ;;  %1786 = vadd.xlane.f32.xlu1 %v1785_v55 }
 0xc22   :  { %1821 = vmax.xlane.f32.xlu0 %v1820_v15  ;;  %1818 = vmax.xlane.f32.xlu1 %v1817_v7 }
 0xc33   :  { %1078 = vperm.xlu1 %2455, %v250_v49  }
 0xc37   :  { %1088 = vperm.xlu1 %2455, %v252_v11  }
 0xc38   :  { %1083 = vperm.xlu0 %2443, %v251_v57  }
 0xc3b   :  { %1093 = vperm.xlu1 %2455, %v253_v39  }
 0xc3f   :  { %1098 = vperm.xlu1 %2455, %v254_v3  }
 0xc43   :  { %1103 = vperm.xlu1 %2455, %v255_v31  }
 0xc47   :  { %1108 = vperm.xlu1 %2455, %v256_v13  }
 0xc4b   :  { %1113 = vperm.xlu1 %2455, %v257_v6  }
 0xc8b   :  { %v1805_v10 = vpop.xlane.xlu0 %1804 }
 0xc8c   :  { %v1815_v41 = vmul.f32 0.0625, %v1805_v10 }
 0xc8f   :  { %v1837_v51 = vpop.xlane.xlu0 %1836 }
 0xc90   :  { %v1847_v21 = vsel %vm1012_vm10, %v1815_v41, %v1837_v51 }
 0xc93   :  { %v1799_v34 = vpop.xlane.xlu1 %1798  ;;  %v1796_v50 = vpop.xlane.xlu0 %1795 }
 0xc94   :  { %v1813_v63 = vmul.f32 0.0625, %v1799_v34  ;;  %v1812_v26 = vmul.f32 0.0625, %v1796_v50  ;;  %v3720_v50 = vpop.f32.mrf.mxu1 }
 0xc97   :  { %v1831_v1 = vpop.xlane.xlu1 %1830  ;;  %v1828_v16 = vpop.xlane.xlu0 %1827 }
 0xc98   :  { %v1845_v42 = vsel %vm1012_vm10, %v1813_v63, %v1831_v1  ;;  %v1844_v60 = vsel %vm1012_vm10, %v1812_v26, %v1828_v16 }
 0xc9b   :  { %v1808_v4 = vpop.xlane.xlu1 %1807  ;;  %v1840_v56 = vpop.xlane.xlu0 %1839 }
 0xc9c   :  { %v1816_v59 = vmul.f32 0.0625, %v1808_v4 }
 0xc9e   :  { %v1848_v0 = vsel %vm1012_vm10, %v1816_v59, %v1840_v56 }
 0xc9f   :  { %v1852_v24 = vpack.c.bf16 %v1848_v0, %v1847_v21  ;;  %v1793_v9 = vpop.xlane.xlu1 %1792  ;;  %v1802_v47 = vpop.xlane.xlu0 %1801 }
 0xca0   :  { %v1814_v40 = vmul.f32 0.0625, %v1802_v47  ;;  %v1811_v61 = vmul.f32 0.0625, %v1793_v9 }
 0xca1   :  { %2363 = vmatpush3.bf16.msra.mxu0 %v1852_v24 }
 0xca2   :  { %2364 = vmatprep.subr.bf16.mxu0 %v3968_v38 }
 0xca3   :  { %v1825_v18 = vpop.xlane.xlu1 %1824  ;;  %v1834_v53 = vpop.xlane.xlu0 %1833 }
 0xca4   :  { %v1846_v25 = vsel %vm1012_vm10, %v1814_v40, %v1834_v53  ;;  %v1843_v28 = vsel %vm1012_vm10, %v1811_v61, %v1825_v18 }
 0xca5   :  { %v1851_v48 = vpack.c.bf16 %v1846_v25, %v1845_v42  ;;  %v1850_v14 = vpack.c.bf16 %v1844_v60, %v1843_v28 }
 0xca7   :  { %2365 = vmatpush3.bf16.msra.mxu0 %v1851_v48  ;;  %v1790_v20 = vpop.xlane.xlu0 %1789  ;;  %v1787_v36 = vpop.xlane.xlu1 %1786 }
 0xca8   :  { %2366 = vmatprep.subr.bf16.mxu0 %v3968_v38  ;;  %v1810_v54 = vmul.f32 0.0625, %v1790_v20  ;;  %v1809_v23 = vmul.f32 0.0625, %v1787_v36 }
 0xcab   :  { %2367 = vmatpush3.bf16.msra.mxu0 %v1850_v14  ;;  %v1822_v55 = vpop.xlane.xlu0 %1821  ;;  %v1819_v15 = vpop.xlane.xlu1 %1818 }
 0xcac   :  { %v1842_v7 = vsel %vm1012_vm10, %v1810_v54, %v1822_v55  ;;  %v1841_v49 = vsel %vm1012_vm10, %v1809_v23, %v1819_v15  ;;  %2368 = vmatprep.subr.bf16.mxu0 %v3968_v38 }
 0xcad   :  { %v1849_v11 = vpack.c.bf16 %v1842_v7, %v1841_v49 }
 0xcaf   :  { %2369 = vmatpush3.bf16.msra.mxu0 %v1849_v11  ;;  %v3675_v57 = vpop.permute.xlu1 %1078 }
 0xcb0   :  { %v1188_v39 = vadd.f32 %v3431_v5, %v3675_v57 }
 0xcb2   :  { %2371 = vmatmul.mubr.msk.bf16.vlgmr.msra.gmra.mxu0 %vm1030_vm11, %v3322_v46  ;;  %1226 = vrot.lane.b32.xlu1 %v1188_v39, %s2796_s20 }
 0xcb3   :  { %v3682_v3 = vpop.permute.xlu0 %1083  ;;  %v3684_v31 = vpop.permute.xlu1 %1088 }
 0xcb4   :  { %v1191_v13 = vadd.f32 %v3435_v32, %v3682_v3  ;;  %v1196_v38 = vadd.f32 %v3429_v43, %v3684_v31 }
 0xcb6   :  { %1228 = vrot.lane.b32.xlu1 %v1191_v13, %s2796_s20  ;;  %1230 = vrot.lane.b32.xlu0 %v1196_v38, %s2796_s20 }
 0xcb7   :  { %v3692_v5 = vpop.permute.xlu1 %1093 }
 0xcb8   :  { %v1199_v46 = vadd.f32 %v3433_v22, %v3692_v5 }
 0xcba   :  { %1232 = vrot.lane.b32.xlu1 %v1199_v46, %s2796_s20 }
 0xcbb   :  { %v3697_v6 = vpop.permute.xlu1 %1098 }
 0xcbc   :  { %v1204_v10 = vadd.f32 %v3439_v30, %v3697_v6 }
 0xcbe   :  { %1234 = vrot.lane.b32.xlu0 %v1204_v10, %s2796_s20 }
 0xcbf   :  { %v3702_v32 = vpop.permute.xlu1 %1103 }
 0xcc0   :  { %v1207_v43 = vadd.f32 %v3443_v12, %v3702_v32  ;;  %v2328_v12 = vpop.f32.mrf.mxu1 }
 0xcc2   :  { %1236 = vrot.lane.b32.xlu1 %v1207_v43, %s2796_s20  ;;  %v3722_v1 = vpop.f32.mrf.mxu1 }
 0xcc3   :  { %v3707_v51 = vpop.permute.xlu1 %1108 }
 0xcc4   :  { %v1212_v22 = vadd.f32 %v3437_v35, %v3707_v51  ;;  %v2329_v16 = vpop.f32.mrf.mxu1 }
 0xcc6   :  { %1238 = vrot.lane.b32.xlu0 %v1212_v22, %s2796_s20  ;;  %v3724_v4 = vpop.f32.mrf.mxu1 }
 0xcc7   :  { %v3712_v34 = vpop.permute.xlu1 %1113 }
 0xcc8   :  { %v3716_v30 = vadd.f32 %v3441_v52, %v3712_v34  ;;  %v2332_v35 = vpop.f32.mrf.mxu1 }
 0xcca   :  { %1240 = vrot.lane.b32.xlu1 %v3716_v30, %s2796_s20  ;;  %v3726_v56 = vpop.f32.mrf.mxu1 }
 0xccc   :  { %v2333_v41 = vpop.f32.mrf.mxu1 }
 0xcce   :  { %v3728_v59 = vpop.f32.mrf.mxu1 }
 0xcd0   :  { %v2336_v21 = vpop.f32.mrf.mxu1 }
 0xcd2   :  { %v3730_v52 = vpop.f32.mrf.mxu1 }
 0xcd4   :  { %v2337_v0 = vpop.f32.mrf.mxu1 }
 0xcd6   :  { %v3732_v24 = vpop.f32.mrf.mxu1 }
 0xcd8   :  { %v2340_v9 = vpop.f32.mrf.mxu1 }
 0xcda   :  { %v3734_v47 = vpop.f32.mrf.mxu1 }
 0xcdc   :  { %v2341_v63 = vpop.f32.mrf.mxu1 }
 0xd28   :  { %v1231_v36 = vpop.permute.xlu0 %1230 }
 0xd29   :  { %v1252_v60 = vadd.f32 %v1231_v36, %v1196_v38 }
 0xd2b   :  { %v1260_v15 = vsub.f32 0.0, %v1252_v60 }
 0xd30   :  { %v1235_v55 = vpop.permute.xlu0 %1234 }
 0xd38   :  { %v1239_v16 = vpop.permute.xlu0 %1238 }
 0xd39   :  { %v1256_v0 = vadd.f32 %v1239_v16, %v1212_v22 }
 0xd72   :  { %v1887_v40 = vpop.f32.mrf.mxu0 }
 0xd73   :  { %v1888_v18 = vadd.f32 %v1887_v40, %v3375_v33  ;;  %v1227_v33 = vpop.permute.xlu1 %1226 }
 0xd74   :  { %v2372_v53 = vpop.f32.mrf.mxu0  ;;  %v1250_v20 = vadd.f32 %v1227_v33, %v1188_v39 }
 0xd75   :  { %v1893_v42 = vmax.f32 %v1888_v18, 0.0  ;;  %v1264_v53 = vsub.f32 0.0, %v1256_v0 }
 0xd76   :  { %v1890_v61 = vpop.f32.mrf.mxu0  ;;  %v1258_v14 = vsub.f32 0.0, %v1250_v20 }
 0xd77   :  { %v1894_v25 = vpack.c.bf16 %v1893_v42, %v1893_v42  ;;  %v1229_v28 = vpop.permute.xlu1 %1228 }
 0xd78   :  { %v2373_v48 = vpop.f32.mrf.mxu0  ;;  %v1251_v54 = vadd.f32 %v1229_v28, %v1191_v13  ;;  %v1266_v49 = vmul.f32 1.442695, %v1258_v14 }
 0xd79   :  { %2385 = vmatprep.subr.msk.bf16.mxu1 %vm1149_vm13, %v1894_v25  ;;  %v1896_v26 = vsel %vm1149_vm13, %v1894_v25, 0  ;;  %v1278_v25 = vmul.f32 1.442695, %v1264_v53 }
 0xd7a   :  { %2375 = vmatpush3.bf16.msra.mxu1 %v1896_v26  ;;  %v1259_v11 = vsub.f32 0.0, %v1251_v54  ;;  %2480 = vpow2.f32 %v1266_v49 }
 0xd7b   :  { %v1233_v23 = vpop.permute.xlu1 %1232 }
 0xd7c   :  { %v1253_v7 = vadd.f32 %v1233_v23, %v1199_v46  ;;  %v1268_v38 = vmul.f32 1.442695, %v1259_v11 }
 0xd7d   :  { %2377 = vmatmul.mubr.msk.bf16.vlgmr.msra.gmra.mxu1 %vm1136_vm12, %v3380_v2  ;;  %v1254_v2 = vadd.f32 %v1235_v55, %v1204_v10  ;;  %v205_v55 = vld [vmem:[#allocation7 + $0x8] sm:$0xff] }
 0xd7e   :  { %2380 = vmatprep.mubr.msk.bf16.mxu1 %vm1136_vm12, %v3382_v45  ;;  %v1261_v41 = vsub.f32 0.0, %v1253_v7 }
 0xd7f   :  { %v1237_v12 = vpop.permute.xlu1 %1236  ;;  %v1262_v13 = vsub.f32 0.0, %v1254_v2  ;;  %v208_v2 = vld [vmem:[#allocation7 + $0x20] sm:$0xff] }
 0xd80   :  { %v1255_v39 = vadd.f32 %v1237_v12, %v1207_v43  ;;  %v207_v12 = vld [vmem:[#allocation7 + $0x18] sm:$0xff] }
 0xd81   :  { %v1274_v18 = vmul.f32 1.442695, %v1262_v13  ;;  %v211_v13 = vld [vmem:[#allocation7 + $0x38] sm:$0xff] }
 0xd82   :  { %v1263_v40 = vsub.f32 0.0, %v1255_v39  ;;  %v209_v39 = vld [vmem:[#allocation7 + $0x28] sm:$0xff] }
 0xd83   :  { %v1241_v46 = vpop.permute.xlu1 %1240 }
 0xd84   :  { %v1257_v22 = vadd.f32 %v1241_v46, %v3716_v30 }
 0xd85   :  { %2381 = vmatmul.mubr.msk.bf16.gmra.mxu1 %vm1136_vm12, %v3389_v62  ;;  %v1270_v62 = vmul.f32 1.442695, %v1260_v15 }
 0xd86   :  { %v1265_v48 = vsub.f32 0.0, %v1257_v22 }
 0xd87   :  { %2482 = vpow2.f32 %v1270_v62  ;;  %v2481_v36 = vpop.eup %2480 }
 0xd88   :  { %2484 = vpow2.f32 %v1268_v38  ;;  %v1282_v14 = vadd.f32 1.0, %v2481_v36 }
 0xd94   :  { %v2483_v60 = vpop.eup %2482 }
 0xd95   :  { %v2485_v23 = vpop.eup %2484 }
 0xd96   :  { %v1283_v7 = vadd.f32 1.0, %v2485_v23 }
 0xe3d   :  { %v2378_v45 = vpop.f32.mrf.mxu1 }
 0xe3e   :  { %v3746_v35 = vadd.f32 %v2378_v45, %v3684_v31  ;;  %v1272_v31 = vmul.f32 1.442695, %v1261_v41  ;;  %v210_v41 = vld [vmem:[#allocation7 + $0x30] sm:$0xff] }
 0xe3f   :  { %v1932_v21 = vpop.f32.mrf.mxu1 }
 0xe40   :  { %1975 = vrot.lane.b32.xlu0 %v3746_v35, %s2796_s20  ;;  %v3751_v10 = vadd.f32 %v1932_v21, %v3675_v57  ;;  %2486 = vpow2.f32 %v1272_v31 }
 0xe41   :  { %v2379_v9 = vpop.f32.mrf.mxu1  ;;  %2488 = vpow2.f32 %v1274_v18 }
 0xe42   :  { %v3754_v63 = vadd.f32 %v2379_v9, %v3692_v5  ;;  %v1276_v5 = vmul.f32 1.442695, %v1263_v40 }
 0xe43   :  { %v1935_v43 = vpop.f32.mrf.mxu1 }
 0xe44   :  { %1971 = vrot.lane.b32.xlu0 %v3751_v10, %s2796_s20  ;;  %1977 = vrot.lane.b32.xlu1 %v3754_v63, %s2796_s20  ;;  %v3762_v42 = vadd.f32 %v1935_v43, %v3682_v3  ;;  %2490 = vpow2.f32 %v1276_v5  ;;  %v1280_v3 = vmul.f32 1.442695, %v1265_v48 }
 0xe45   :  { %v2382_v57 = vpop.f32.mrf.mxu1  ;;  %2492 = vpow2.f32 %v1278_v25 }
 0xe46   :  { %v3772_v28 = vadd.f32 %v2382_v57, %v3707_v51  ;;  %2494 = vpow2.f32 %v1280_v3  ;;  %v206_v51 = vld [vmem:[#allocation7 + $0x10] sm:$0xff] }
 0xe47   :  { %v1948_v61 = vpop.f32.mrf.mxu1  ;;  %2496 = vrcp.f32 %v1282_v14 }
 0xe48   :  { %v3765_v26 = vadd.f32 %v1948_v61, %v3697_v6  ;;  %1973 = vrot.lane.b32.xlu1 %v3762_v42, %s2796_s20  ;;  %v204_v6 = vld [vmem:[#allocation7] sm:$0xff] }
 0xe49   :  { %v2383_v30 = vpop.f32.mrf.mxu1 }
 0xe4a   :  { %1979 = vrot.lane.b32.xlu0 %v3765_v26, %s2796_s20  ;;  %v3782_v54 = vadd.f32 %v2383_v30, %v3712_v34 }
 0xe4b   :  { %v1951_v33 = vpop.f32.mrf.mxu1 }
 0xe4c   :  { %v3775_v20 = vadd.f32 %v1951_v33, %v3702_v32  ;;  %v1284_v32 = vadd.f32 1.0, %v2483_v60 }
 0xe4d   :  { %v2487_v15 = vpop.eup %2486 }
 0xe4e   :  { %1983 = vrot.lane.b32.xlu0 %v3772_v28, %s2796_s20  ;;  %1981 = vrot.lane.b32.xlu1 %v3775_v20, %s2796_s20  ;;  %v2489_v49 = vpop.eup %2488  ;;  %2498 = vrcp.f32 %v1284_v32  ;;  %v1285_v11 = vadd.f32 1.0, %v2487_v15 }
 0xe4f   :  { %2500 = vrcp.f32 %v1283_v7  ;;  %v1286_v16 = vadd.f32 1.0, %v2489_v49 }
 0xe50   :  { %2502 = vrcp.f32 %v1285_v11 }
 0xe51   :  { %v2491_v34 = vpop.eup %2490  ;;  %2504 = vrcp.f32 %v1286_v16 }
 0xe52   :  { %391 = vperm.xlu0 %2443, %v204_v6   ;;  %1985 = vrot.lane.b32.xlu1 %v3782_v54, %s2796_s20  ;;  %v2493_v45 = vpop.eup %2492  ;;  %v1287_v62 = vadd.f32 1.0, %v2491_v34 }
 0xe53   :  { %v1288_v21 = vadd.f32 1.0, %v2493_v45  ;;  %v2495_v38 = vpop.eup %2494 }
 0xe54   :  { %2506 = vrcp.f32 %v1287_v62  ;;  %v1289_v0 = vadd.f32 1.0, %v2495_v38  ;;  %v2497_v46 = vpop.eup %2496 }
 0xe55   :  { %2508 = vrcp.f32 %v1288_v21 }
 0xe56   :  { %401 = vperm.xlu0 %2443, %v206_v51   ;;  %396 = vperm.xlu1 %2455, %v205_v55   ;;  %2510 = vrcp.f32 %v1289_v0 }
 0xe5a   :  { %411 = vperm.xlu0 %2443, %v208_v2   ;;  %406 = vperm.xlu1 %2455, %v207_v12  }
 0xe5b   :  { %v2499_v9 = vpop.eup %2498 }
 0xe5c   :  { %v2501_v31 = vpop.eup %2500 }
 0xe5d   :  { %v2503_v40 = vpop.eup %2502 }
 0xe5e   :  { %421 = vperm.xlu0 %2443, %v210_v41   ;;  %416 = vperm.xlu1 %2455, %v209_v39   ;;  %v2505_v43 = vpop.eup %2504 }
 0xe61   :  { %v2507_v18 = vpop.eup %2506 }
 0xe62   :  { %426 = vperm.xlu1 %2455, %v211_v13   ;;  %1308 = vperm.xlu0 %2443, %v2497_v46   ;;  %v2509_v53 = vpop.eup %2508 }
 0xe63   :  { %v2511_v22 = vpop.eup %2510 }
 0xe66   :  { %1318 = vperm.xlu0 %2443, %v2499_v9   ;;  %1313 = vperm.xlu1 %2455, %v2501_v31  }
 0xe6a   :  { %1328 = vperm.xlu0 %2443, %v2505_v43   ;;  %1323 = vperm.xlu1 %2455, %v2503_v40  }
 0xe6e   :  { %1338 = vperm.xlu0 %2443, %v2509_v53   ;;  %1333 = vperm.xlu1 %2455, %v2507_v18  }
 0xe72   :  { %1343 = vperm.xlu1 %2455, %v2511_v22  }
 0xeb2   :  { %v1976_v57 = vpop.permute.xlu0 %1975 }
 0xeb3   :  { %v1997_v5 = vadd.f32 %v1976_v57, %v3746_v35 }
 0xeb5   :  { %v2005_v61 = vsub.f32 0.0, %v1997_v5 }
 0xeb6   :  { %v1972_v25 = vpop.permute.xlu0 %1971  ;;  %v1978_v48 = vpop.permute.xlu1 %1977 }
 0xeb7   :  { %v2015_v30 = vmul.f32 1.442695, %v2005_v61  ;;  %v1995_v33 = vadd.f32 %v1972_v25, %v3751_v10  ;;  %v1998_v3 = vadd.f32 %v1978_v48, %v3754_v63 }
 0xeb9   :  { %2512 = vpow2.f32 %v2015_v30  ;;  %v2003_v36 = vsub.f32 0.0, %v1995_v33  ;;  %v2006_v6 = vsub.f32 0.0, %v1998_v3 }
 0xeba   :  { %v1974_v60 = vpop.permute.xlu1 %1973 }
 0xebb   :  { %v2011_v14 = vmul.f32 1.442695, %v2003_v36  ;;  %v2017_v23 = vmul.f32 1.442695, %v2006_v6  ;;  %v1996_v32 = vadd.f32 %v1974_v60, %v3762_v42 }
 0xebc   :  { %v1980_v51 = vpop.permute.xlu0 %1979 }
 0xebd   :  { %2514 = vpow2.f32 %v2011_v14  ;;  %v2004_v55 = vsub.f32 0.0, %v1996_v32  ;;  %v1999_v35 = vadd.f32 %v1980_v51, %v3765_v26  ;;  %v3982_v32 = vld [vmem:[#allocation38_spill] sm:$0xff] }
 0xebe   :  { %2516 = vpow2.f32 %v2017_v23 }
 0xebf   :  { %v2013_v15 = vmul.f32 1.442695, %v2004_v55  ;;  %v2007_v7 = vsub.f32 0.0, %v1999_v35  ;;  %v3983_v55 = vld [vmem:[#allocation37_spill] sm:$0xff] }
 0xec0   :  { %v1984_v49 = vpop.permute.xlu0 %1983  ;;  %v1982_v10 = vpop.permute.xlu1 %1981 }
 0xec1   :  { %2518 = vpow2.f32 %v2013_v15  ;;  %v2019_v63 = vmul.f32 1.442695, %v2007_v7  ;;  %v2001_v11 = vadd.f32 %v1984_v49, %v3772_v28  ;;  %v2000_v2 = vadd.f32 %v1982_v10, %v3775_v20  ;;  %v3984_v49 = vld [vmem:[#allocation40_spill] sm:$0xff] }
 0xec3   :  { %2520 = vpow2.f32 %v2019_v63  ;;  %v2009_v12 = vsub.f32 0.0, %v2001_v11  ;;  %v2008_v34 = vsub.f32 0.0, %v2000_v2  ;;  %v3985_v2 = vld [vmem:[#allocation39_spill] sm:$0xff] }
 0xec4   :  { %v1986_v42 = vpop.permute.xlu1 %1985 }
 0xec5   :  { %v2023_v16 = vmul.f32 1.442695, %v2009_v12  ;;  %v2021_v45 = vmul.f32 1.442695, %v2008_v34  ;;  %v2002_v62 = vadd.f32 %v1986_v42, %v3782_v54  ;;  %v3986_v42 = vld [vmem:[#allocation34_spill] sm:$0xff] }
 0xec6   :  { %v2513_v26 = vpop.eup %2512 }
 0xec7   :  { %v2029_v41 = vadd.f32 1.0, %v2513_v26  ;;  %2522 = vpow2.f32 %v2023_v16  ;;  %v2010_v39 = vsub.f32 0.0, %v2002_v62 }
 0xec8   :  { %2524 = vpow2.f32 %v2021_v45  ;;  %v3987_v45 = vld [vmem:[#allocation36_spill] sm:$0xff] }
 0xec9   :  { %2526 = vrcp.f32 %v2029_v41  ;;  %v2025_v21 = vmul.f32 1.442695, %v2010_v39 }
 0xeca   :  { %v2515_v38 = vpop.eup %2514 }
 0xecb   :  { %v2517_v13 = vpop.eup %2516  ;;  %v2027_v28 = vadd.f32 1.0, %v2515_v38  ;;  %2528 = vpow2.f32 %v2025_v21  ;;  %v3988_v38 = vld [vmem:[#allocation42_spill] sm:$0xff] }
 0xecc   :  { %v2030_v20 = vadd.f32 1.0, %v2517_v13 }
 0xecd   :  { %2530 = vrcp.f32 %v2027_v28  ;;  %v3794_v0 = vpop.permute.xlu0 %391  ;;  %v3989_v28 = vld [vmem:[#allocation41_spill] sm:$0xff] }
 0xece   :  { %v2519_v46 = vpop.eup %2518  ;;  %2532 = vrcp.f32 %v2030_v20  ;;  %v429_v51 = vadd.f32 %v3794_v0, %v3982_v32 }
 0xecf   :  { %v2028_v9 = vadd.f32 1.0, %v2519_v46 }
 0xed0   :  { %v2521_v31 = vpop.eup %2520 }
 0xed1   :  { %2534 = vrcp.f32 %v2028_v9  ;;  %v2031_v54 = vadd.f32 1.0, %v2521_v31  ;;  %v3796_v40 = vpop.permute.xlu0 %401  ;;  %v3798_v43 = vpop.permute.xlu1 %396 }
 0xed2   :  { %v431_v10 = vadd.f32 %v3796_v40, %v3984_v49  ;;  %v430_v12 = vadd.f32 %v3798_v43, %v3985_v2  ;;  %v3995_v49 = vld [vmem:[#allocation35_spill] sm:$0xff] }
 0xed3   :  { %2536 = vrcp.f32 %v2031_v54 }
 0xed4   :  { %v2523_v18 = vpop.eup %2522 }
 0xed5   :  { %v2525_v53 = vpop.eup %2524  ;;  %v2033_v22 = vadd.f32 1.0, %v2523_v18  ;;  %v3800_v57 = vpop.permute.xlu0 %411  ;;  %v3990_v18 = vld [vmem:[#allocation32_spill] sm:$0xff] }
 0xed6   :  { %v3802_v5 = vpop.permute.xlu1 %406  ;;  %v2527_v61 = vpop.eup %2526  ;;  %v2032_v25 = vadd.f32 1.0, %v2525_v53  ;;  %v433_v13 = vadd.f32 %v3800_v57, %v3988_v38 }
 0xed7   :  { %2538 = vrcp.f32 %v2033_v22  ;;  %2063 = vperm.xlu0 %2443, %v2527_v61   ;;  %v432_v20 = vadd.f32 %v3802_v5, %v3989_v28  ;;  %v3991_v22 = vld [vmem:[#allocation31_spill] sm:$0xff] }
 0xed8   :  { %v2529_v48 = vpop.eup %2528  ;;  %2540 = vrcp.f32 %v2032_v25 }
 0xed9   :  { %v2034_v30 = vadd.f32 1.0, %v2529_v48  ;;  %v3804_v33 = vpop.permute.xlu0 %421 }
 0xeda   :  { %v3806_v3 = vpop.permute.xlu1 %416  ;;  %v2531_v36 = vpop.eup %2530 }
 0xedb   :  { %v2533_v6 = vpop.eup %2532  ;;  %2542 = vrcp.f32 %v2034_v30  ;;  %2053 = vperm.xlu0 %2443, %v2531_v36   ;;  %v3992_v36 = vld [vmem:[#allocation44_spill] sm:$0xff] }
 0xedc   :  { %2068 = vperm.xlu1 %2455, %v2533_v6   ;;  %v435_v6 = vadd.f32 %v3804_v33, %v3992_v36 }
 0xedd   :  { %v1309_v60 = vpop.permute.xlu0 %1308 }
 0xede   :  { %v3808_v14 = vpop.permute.xlu1 %426  ;;  %v2535_v23 = vpop.eup %2534  ;;  %v1346_v35 = vmul.f32 %v1309_v60, %v3983_v55  ;;  %v3993_v60 = vld [vmem:[#allocation43_spill] sm:$0xff] }
 0xedf   :  { %v1466_v36 = vadd.f32 %v3734_v47, %v3808_v14 }
 0xee0   :  { %v2537_v15 = vpop.eup %2536  ;;  %v1354_v7 = vadd.f32 %v1346_v35, %v429_v51  ;;  %2058 = vperm.xlu1 %2455, %v2535_v23   ;;  %v434_v23 = vadd.f32 %v3806_v3, %v3993_v60 }
 0xee1   :  { %2073 = vperm.xlu0 %2443, %v2537_v15   ;;  %v1319_v63 = vpop.permute.xlu0 %1318  ;;  %v3994_v15 = vld [vmem:[#allocation30_spill] sm:$0xff] }
 0xee2   :  { %v1314_v11 = vpop.permute.xlu1 %1313  ;;  %v1362_v34 = vmax.f32 %v1354_v7, 0.0  ;;  %v1348_v16 = vmul.f32 %v1319_v63, %v3986_v42 }
 0xee3   :  { %v1347_v62 = vmul.f32 %v1314_v11, %v3987_v45  ;;  %v3997_v45 = vld [vmem:[#allocation33_spill] sm:$0xff] }
 0xee4   :  { %v2539_v26 = vpop.eup %2538  ;;  %1370 = vst.msk [vmem:[%s3935_s13] sm:$0xff] %vm286_vm1, %v1362_v34  ;;  %v1356_v41 = vadd.f32 %v1348_v16, %v431_v10 }
 0xee5   :  { %v1355_v39 = vadd.f32 %v1347_v62, %v430_v12  ;;  %v2541_v21 = vpop.eup %2540  ;;  %2083 = vperm.xlu0 %2443, %v2539_v26   ;;  %v1329_v46 = vpop.permute.xlu0 %1328  ;;  %v3996_v12 = vld [vmem:[#allocation45_spill] sm:$0xff] }
 0xee6   :  { %v1324_v9 = vpop.permute.xlu1 %1323  ;;  %v1364_v31 = vmax.f32 %v1356_v41, 0.0  ;;  %v1350_v53 = vmul.f32 %v1329_v46, %v3990_v18  ;;  %2078 = vperm.xlu1 %2455, %v2541_v21   ;;  %v436_v34 = vadd.f32 %v3808_v14, %v3996_v12  ;;  %v1461_v21 = vadd.f32 %v3724_v4, %v3796_v40 }
 0xee7   :  { %v1363_v54 = vmax.f32 %v1355_v39, 0.0  ;;  %v1349_v61 = vmul.f32 %v1324_v9, %v3991_v22 }
 0xee8   :  { %v2543_v25 = vpop.eup %2542  ;;  %1372 = vst.msk [vmem:[%s3935_s13 + $0x10] sm:$0xff] %vm286_vm1, %v1364_v31  ;;  %v1358_v48 = vadd.f32 %v1350_v53, %v433_v13 }
 0xee9   :  { %1371 = vst.msk [vmem:[%s3935_s13 + $0x8] sm:$0xff] %vm286_vm1, %v1363_v54  ;;  %v1357_v30 = vadd.f32 %v1349_v61, %v432_v20  ;;  %v1339_v32 = vpop.permute.xlu0 %1338  ;;  %v1459_v20 = vadd.f32 %v3720_v50, %v3794_v0  ;;  %v1462_v54 = vadd.f32 %v3726_v56, %v3802_v5  ;;  %v1460_v50 = vadd.f32 %v3722_v1, %v3798_v43 }
 0xeea   :  { %v1334_v51 = vpop.permute.xlu1 %1333  ;;  %v1366_v55 = vmax.f32 %v1358_v48, 0.0  ;;  %v1352_v7 = vmul.f32 %v1339_v32, %v3994_v15  ;;  %2088 = vperm.xlu1 %2455, %v2543_v25   ;;  %v1463_v56 = vadd.f32 %v3728_v59, %v3800_v57  ;;  %v1465_v61 = vadd.f32 %v3732_v24, %v3804_v33 }
 0xeeb   :  { %v1365_v35 = vmax.f32 %v1357_v30, 0.0  ;;  %v1351_v10 = vmul.f32 %v1334_v51, %v3995_v49  ;;  %v1464_v48 = vadd.f32 %v3730_v52, %v3806_v3 }
 0xeec   :  { %1374 = vst.msk [vmem:[%s3935_s13 + $0x20] sm:$0xff] %vm286_vm1, %v1366_v55  ;;  %v1360_v63 = vadd.f32 %v1352_v7, %v435_v6 }
 0xeed   :  { %1373 = vst.msk [vmem:[%s3935_s13 + $0x18] sm:$0xff] %vm286_vm1, %v1365_v35  ;;  %v1359_v11 = vadd.f32 %v1351_v10, %v434_v23 }
 0xeee   :  { %v1344_v2 = vpop.permute.xlu1 %1343  ;;  %v1368_v42 = vmax.f32 %v1360_v63, 0.0 }
 0xeef   :  { %v1367_v16 = vmax.f32 %v1359_v11, 0.0  ;;  %v1353_v62 = vmul.f32 %v1344_v2, %v3997_v45 }
 0xef0   :  { %1376 = vst.msk [vmem:[%s3935_s13 + $0x30] sm:$0xff] %vm286_vm1, %v1368_v42 }
 0xef1   :  { %1375 = vst.msk [vmem:[%s3935_s13 + $0x28] sm:$0xff] %vm286_vm1, %v1367_v16  ;;  %v1361_v26 = vadd.f32 %v1353_v62, %v436_v34 }
 0xef3   :  { %v1369_v41 = vmax.f32 %v1361_v26, 0.0 }
 0xef5   :  { %1377 = vst.msk [vmem:[%s3935_s13 + $0x38] sm:$0xff] %vm286_vm1, %v1369_v41 }
 0xf52   :  { %v2064_v39 = vpop.permute.xlu0 %2063 }
 0xf53   :  { %v2093_v38 = vmul.f32 %v2064_v39, %v3630_v27 }
 0xf55   :  { %v2101_v13 = vadd.f32 %v2093_v38, %v1461_v21 }
 0xf56   :  { %v2054_v28 = vpop.permute.xlu0 %2053 }
 0xf57   :  { %v2109_v46 = vmax.f32 %v2101_v13, 0.0  ;;  %v2091_v9 = vmul.f32 %v2054_v28, %v3648_v19  ;;  %v2069_v31 = vpop.permute.xlu1 %2068 }
 0xf58   :  { %v2094_v18 = vmul.f32 %v2069_v31, %v3594_v29 }
 0xf59   :  { %2200 = vst.msk [vmem:[%s3935_s13 + $0x50] sm:$0xff] %vm286_vm1, %v2109_v46  ;;  %v2099_v27 = vadd.f32 %v2091_v9, %v1459_v20 }
 0xf5a   :  { %v2102_v4 = vadd.f32 %v2094_v18, %v1462_v54 }
 0xf5b   :  { %v2107_v40 = vmax.f32 %v2099_v27, 0.0  ;;  %v2059_v53 = vpop.permute.xlu1 %2058 }
 0xf5c   :  { %v2110_v0 = vmax.f32 %v2102_v4, 0.0  ;;  %v2092_v19 = vmul.f32 %v2059_v53, %v3650_v44  ;;  %v2074_v22 = vpop.permute.xlu0 %2073 }
 0xf5d   :  { %2198 = vst.msk [vmem:[%s3935_s13 + $0x40] sm:$0xff] %vm286_vm1, %v2107_v40  ;;  %v2095_v29 = vmul.f32 %v2074_v22, %v3602_v58 }
 0xf5e   :  { %2201 = vst.msk [vmem:[%s3935_s13 + $0x58] sm:$0xff] %vm286_vm1, %v2110_v0  ;;  %v2100_v1 = vadd.f32 %v2092_v19, %v1460_v50 }
 0xf5f   :  { %v2103_v43 = vadd.f32 %v2095_v29, %v1463_v56 }
 0xf60   :  { %v2108_v5 = vmax.f32 %v2100_v1, 0.0  ;;  %v2084_v44 = vpop.permute.xlu0 %2083 }
 0xf61   :  { %v2111_v59 = vmax.f32 %v2103_v43, 0.0  ;;  %v2097_v57 = vmul.f32 %v2084_v44, %v3572_v8  ;;  %v2079_v25 = vpop.permute.xlu1 %2078 }
 0xf62   :  { %2199 = vst.msk [vmem:[%s3935_s13 + $0x48] sm:$0xff] %vm286_vm1, %v2108_v5  ;;  %v2096_v58 = vmul.f32 %v2079_v25, %v3638_v37 }
 0xf63   :  { %2202 = vst.msk [vmem:[%s3935_s13 + $0x60] sm:$0xff] %vm286_vm1, %v2111_v59  ;;  %v2105_v24 = vadd.f32 %v2097_v57, %v1465_v61 }
 0xf64   :  { %v2104_v33 = vadd.f32 %v2096_v58, %v1464_v48 }
 0xf65   :  { %v2113_v30 = vmax.f32 %v2105_v24, 0.0  ;;  %v2089_v8 = vpop.permute.xlu1 %2088 }
 0xf66   :  { %v2112_v52 = vmax.f32 %v2104_v33, 0.0  ;;  %v2098_v3 = vmul.f32 %v2089_v8, %v3614_v17 }
 0xf67   :  { %2204 = vst.msk [vmem:[%s3935_s13 + $0x70] sm:$0xff] %vm286_vm1, %v2113_v30 }
 0xf68   :  { %2203 = vst.msk [vmem:[%s3935_s13 + $0x68] sm:$0xff] %vm286_vm1, %v2112_v52  ;;  %v2106_v37 = vadd.f32 %v2098_v3, %v1466_v36 }
 0xf6a   :  { %v2114_v6 = vmax.f32 %v2106_v37, 0.0 }
 0xf6c   :  { %2205 = vst.msk [vmem:[%s3935_s13 + $0x78] sm:$0xff] %vm286_vm1, %v2114_v6 }
 0xf6d   :  { %2128 = vsyncpa [#allocation3], 1 }
 0xf6e   :  { %2129 = vsyncpa [#allocation5], 1 }
 0xf6f   :  { %2130 = vsyncpa [#allocation8], 1 }
 0xf70   :  { %2131 = vsyncpa [#allocation11], 1 }
 0xf71   :  { %2132 = vsyncpa [#allocation14], 1 }
 0xf72   :  { %2133 = vsyncpa [#allocation17], 1 }

</bundles_post_ra>
